<compile_context>
chip_gen: v7x
topology: tpu7x:2x2x1
jax: 0.10.0
libtpu: 0.0.40
codegen_flags: <defaults>
</compile_context>

<pallas_src>
import functools

import numpy as np
import jax
import jax.numpy as jnp
from jax.experimental import pallas as pl
from jax.experimental.pallas import tpu as pltpu


def _round_up(x, m):
    return (x + m - 1) // m * m


def _vmem_limit(nbytes):
    """Generous but bounded scoped-VMEM request (safe on v5e/v6e/v7x)."""
    return int(min(max(4 * nbytes + (1 << 20), 4 << 20), 32 << 20))


# ----------------------------------------------------------------------------
# Pallas kernels
# ----------------------------------------------------------------------------
def _conv3x3_bn_stats_kernel(xf_ref, w_ref, b_ref, valid_ref,
                             y_ref, sum_ref, sq_ref, patch_ref,
                             *, Wp, L, L_pad):
    """conv_extract (3x3, pad 1) for Bb images + BN1 partial stat sums.

    xf_ref   : (Bb, Cin, Lin_pad)  bf16 zero-padded input, spatial flat (stride Wp)
    w_ref    : (Cout, 9*Cin)       bf16 im2col weights (tap-major, channel-minor)
    b_ref    : (Cout, 1)           f32 bias
    valid_ref: (1, L_pad)          1.0 on real pixels, 0.0 on junk/pad lanes
    y_ref    : (Bb, Cout, L_pad)   bf16 conv output (row-padded flat layout)
    sum_ref  : (1, Cout, 1)        f32 per-block channel sum      (for BN1)
    sq_ref   : (1, Cout, 1)        f32 per-block channel sum-sq   (for BN1)
    patch_ref: (9*Cin, Bb*L_pad)   bf16 VMEM scratch (im2col patch matrix)
    """
    Bb, Cin, _ = xf_ref.shape
    Cout = w_ref.shape[0]
    zero_tail = jnp.zeros((9 * Cin, L_pad - L), patch_ref.dtype)

    # Build the merged im2col matrix: 9 static lane-slices per image.
    for b in range(Bb):
        xb = xf_ref[b]                                   # (Cin, Lin_pad) bf16
        off = b * L_pad
        for t in range(9):
            dy, dx = t // 3, t % 3
            s = dy * Wp + dx
            patch_ref[t * Cin:(t + 1) * Cin, off:off + L] = xb[:, s:s + L]
        patch_ref[:, off + L:off + L_pad] = zero_tail    # keep pad lanes finite

    # One deep MXU matmul for all Bb images (contraction depth 9*Cin).
    y = jnp.dot(w_ref[...], patch_ref[...],
                preferred_element_type=jnp.float32) + b_ref[...]

    valid = valid_ref[...]                               # (1, L_pad)
    s_acc = jnp.zeros((Cout, 1), jnp.float32)
    q_acc = jnp.zeros((Cout, 1), jnp.float32)
    for b in range(Bb):
        yb = y[:, b * L_pad:(b + 1) * L_pad]             # (Cout, L_pad) f32
        y_ref[b, :, :] = yb.astype(y_ref.dtype)
        yv = jnp.where(valid > 0, yb, 0.0)               # NaN-safe masking
        s_acc = s_acc + jnp.sum(yv, axis=1, keepdims=True)
        q_acc = q_acc + jnp.sum(yv * yv, axis=1, keepdims=True)
    sum_ref[...] = s_acc[None]
    sq_ref[...] = q_acc[None]


def _bn_relu_conv1x1_stats_kernel(y_ref, s1_ref, q1_ref, g1_ref, be1_ref,
                                  w2_ref, valid_ref,
                                  z_ref, sum_ref, sq_ref, *, inv_count, eps):
    """BN1 (batch stats folded in-kernel) + ReLU + conv2(1x1) + BN2 partial sums."""
    Bb, Cin, L_pad = y_ref.shape
    M = w2_ref.shape[0]

    # Fold BN1 batch statistics (reduce per-block partials) into scale/shift.
    s1 = jnp.sum(s1_ref[...], axis=0)                    # (Cin, 1)
    q1 = jnp.sum(q1_ref[...], axis=0)                    # (Cin, 1)
    mean = s1 * inv_count
    var = jnp.maximum(q1 * inv_count - mean * mean, 0.0)
    scale = g1_ref[...] * jax.lax.rsqrt(var + eps)
    shift = be1_ref[...] - mean * scale

    valid = valid_ref[...]                               # (1, L_pad)
    s_acc = jnp.zeros((M, 1), jnp.float32)
    q_acc = jnp.zeros((M, 1), jnp.float32)
    for b in range(Bb):
        yb = y_ref[b].astype(jnp.float32)                # (Cin, L_pad)
        h = jnp.maximum(yb * scale + shift, 0.0)         # bn1 + relu (f32)
        z = jnp.dot(w2_ref[...], h.astype(w2_ref.dtype),
                    preferred_element_type=jnp.float32)  # (M, L_pad) f32
        z_ref[b, :, :] = z.astype(z_ref.dtype)
        zv = jnp.where(valid > 0, z, 0.0)
        s_acc = s_acc + jnp.sum(zv, axis=1, keepdims=True)
        q_acc = q_acc + jnp.sum(zv * zv, axis=1, keepdims=True)
    sum_ref[...] = s_acc[None]
    sq_ref[...] = q_acc[None]


def _bn_elu_mask_kernel(z_ref, s2_ref, q2_ref, g2_ref, be2_ref, m_ref, o_ref,
                        *, inv_count, eps):
    """BN2 (batch stats folded in-kernel) + (elu(x)+1) + border-mask multiply."""
    Bb = z_ref.shape[0]
    s2 = jnp.sum(s2_ref[...], axis=0)                    # (M, 1)
    q2 = jnp.sum(q2_ref[...], axis=0)
    mean = s2 * inv_count
    var = jnp.maximum(q2 * inv_count - mean * mean, 0.0)
    scale = g2_ref[...] * jax.lax.rsqrt(var + eps)
    shift = be2_ref[...] - mean * scale

    m = m_ref[...]                                       # (1, L_pad)
    for b in range(Bb):
        zn = z_ref[b].astype(jnp.float32) * scale + shift
        e = jnp.where(zn > 0, zn + 1.0, jnp.exp(jnp.minimum(zn, 0.0)))  # elu+1
        o_ref[b, :, :] = (e * m).astype(o_ref.dtype)


# ----------------------------------------------------------------------------
# pallas_call wrappers
# ----------------------------------------------------------------------------
def _conv3x3_call(xf, w1_mat, b1_col, valid, *, Wp, L, L_pad, Bb):
    B, Cin, Lin_pad = xf.shape
    Cout = w1_mat.shape[0]
    nblk = B // Bb
    nbytes = (2 * (Bb * Cin * Lin_pad * 2 + Cout * 9 * Cin * 2 + Cout * 4
                   + L_pad * 4 + Bb * Cout * L_pad * 2 + 2 * Cout * 4)
              + 9 * Cin * Bb * L_pad * 2)
    return pl.pallas_call(
        functools.partial(_conv3x3_bn_stats_kernel, Wp=Wp, L=L, L_pad=L_pad),
        out_shape=(jax.ShapeDtypeStruct((B, Cout, L_pad), jnp.bfloat16),
                   jax.ShapeDtypeStruct((nblk, Cout, 1), jnp.float32),
                   jax.ShapeDtypeStruct((nblk, Cout, 1), jnp.float32)),
        grid=(nblk,),
        in_specs=[
            pl.BlockSpec((Bb, Cin, Lin_pad), lambda i: (i, 0, 0)),
            pl.BlockSpec((Cout, 9 * Cin), lambda i: (0, 0)),   # resident weights
            pl.BlockSpec((Cout, 1), lambda i: (0, 0)),
            pl.BlockSpec((1, L_pad), lambda i: (0, 0)),
        ],
        out_specs=(
            pl.BlockSpec((Bb, Cout, L_pad), lambda i: (i, 0, 0)),
            pl.BlockSpec((1, Cout, 1), lambda i: (i, 0, 0)),
            pl.BlockSpec((1, Cout, 1), lambda i: (i, 0, 0)),
        ),
        scratch_shapes=[pltpu.VMEM((9 * Cin, Bb * L_pad), jnp.bfloat16)],
        compiler_params=pltpu.CompilerParams(
            dimension_semantics=("parallel",),
            vmem_limit_bytes=_vmem_limit(nbytes)),
    )(xf, w1_mat, b1_col, valid)


def _bn_relu_conv1x1_call(y, s1, q1, g1, be1, w2_mat, valid, *, Bb, inv_count,
                          eps=1e-5):
    B, Cin, L_pad = y.shape
    M = w2_mat.shape[0]
    nblk = B // Bb
    nbytes = 2 * (Bb * Cin * L_pad * 2 + 2 * nblk * Cin * 4 + 2 * Cin * 4
                  + M * Cin * 2 + L_pad * 4 + Bb * M * L_pad * 2 + 2 * M * 4)
    return pl.pallas_call(
        functools.partial(_bn_relu_conv1x1_stats_kernel,
                          inv_count=inv_count, eps=eps),
        out_shape=(jax.ShapeDtypeStruct((B, M, L_pad), jnp.bfloat16),
                   jax.ShapeDtypeStruct((nblk, M, 1), jnp.float32),
                   jax.ShapeDtypeStruct((nblk, M, 1), jnp.float32)),
        grid=(nblk,),
        in_specs=[
            pl.BlockSpec((Bb, Cin, L_pad), lambda i: (i, 0, 0)),
            pl.BlockSpec((nblk, Cin, 1), lambda i: (0, 0, 0)),  # BN1 partials
            pl.BlockSpec((nblk, Cin, 1), lambda i: (0, 0, 0)),
            pl.BlockSpec((Cin, 1), lambda i: (0, 0)),
            pl.BlockSpec((Cin, 1), lambda i: (0, 0)),
            pl.BlockSpec((M, Cin), lambda i: (0, 0)),           # resident weights
            pl.BlockSpec((1, L_pad), lambda i: (0, 0)),
        ],
        out_specs=(
            pl.BlockSpec((Bb, M, L_pad), lambda i: (i, 0, 0)),
            pl.BlockSpec((1, M, 1), lambda i: (i, 0, 0)),
            pl.BlockSpec((1, M, 1), lambda i: (i, 0, 0)),
        ),
        compiler_params=pltpu.CompilerParams(
            dimension_semantics=("parallel",),
            vmem_limit_bytes=_vmem_limit(nbytes)),
    )(y, s1, q1, g1, be1, w2_mat, valid)


def _bn_elu_mask_call(z, s2, q2, g2, be2, mask_flat, *, Bb, inv_count, eps=1e-5):
    B, M, L_pad = z.shape
    nblk = B // Bb
    nbytes = 2 * (Bb * M * L_pad * 2 + 2 * nblk * M * 4 + 2 * M * 4
                  + L_pad * 4 + Bb * M * L_pad * 4)
    return pl.pallas_call(
        functools.partial(_bn_elu_mask_kernel, inv_count=inv_count, eps=eps),
        out_shape=jax.ShapeDtypeStruct((B, M, L_pad), jnp.float32),
        grid=(nblk,),
        in_specs=[
            pl.BlockSpec((Bb, M, L_pad), lambda i: (i, 0, 0)),
            pl.BlockSpec((nblk, M, 1), lambda i: (0, 0, 0)),    # BN2 partials
            pl.BlockSpec((nblk, M, 1), lambda i: (0, 0, 0)),
            pl.BlockSpec((M, 1), lambda i: (0, 0)),
            pl.BlockSpec((M, 1), lambda i: (0, 0)),
            pl.BlockSpec((1, L_pad), lambda i: (0, 0)),
        ],
        out_specs=pl.BlockSpec((Bb, M, L_pad), lambda i: (i, 0, 0)),
        compiler_params=pltpu.CompilerParams(
            dimension_semantics=("parallel",),
            vmem_limit_bytes=_vmem_limit(nbytes)),
    )(z, s2, q2, g2, be2, mask_flat)


# ----------------------------------------------------------------------------
# Host-side constants (masks in the padded flat layout)
# ----------------------------------------------------------------------------
def _flat_masks(H, W, L_pad):
    """Validity mask + nearest-resized 24x24 border mask, flat (stride Wp) layout."""
    Wp = W + 2
    L = (H - 1) * Wp + W
    j = np.arange(L_pad)
    hh, ww = j // Wp, j % Wp
    valid = ((j < L) & (ww < W)).astype(np.float32)
    base = np.zeros((24, 24), np.float32)
    base[2:-2, 2:-2] = 1.0
    ri = np.minimum((np.arange(H) * 24) // H, 23)      # F.interpolate 'nearest'
    ci = np.minimum((np.arange(W) * 24) // W, 23)
    m2d = base[np.ix_(ri, ci)]                          # (H, W)
    mflat = m2d[np.minimum(hh, H - 1), np.minimum(ww, W - 1)] * valid
    return (jnp.asarray(valid.reshape(1, L_pad)),
            jnp.asarray(mflat.reshape(1, L_pad).astype(np.float32)))


# ----------------------------------------------------------------------------
# Forward pass
# ----------------------------------------------------------------------------
@functools.partial(jax.jit, static_argnames=("out_channels",))
def attention_map_forward(x, params, *, out_channels):
    """x: (B, C, H, W) NCHW float32. Returns (B, out_channels, H, W) float32."""
    B, C, H, W = x.shape
    if out_channels == 0:                                # Python-level branch
        return jnp.ones((B, 1, 1, 1), x.dtype)

    Hp, Wp = H + 2, W + 2
    L = (H - 1) * Wp + W            # lanes carrying real conv output
    L_out = H * Wp                  # lanes needed for the final free view
    L_pad = _round_up(L_out, 128)   # 128-aligned activation lane width
    Lin = Hp * Wp
    Lin_pad = _round_up(Lin, 128)   # 128-aligned input lane width

    # 2 batch blocks when possible: feeds both v7x TensorCores ("parallel"),
    # single block otherwise (odd / size-1 batches).
    nblk = 2 if (B >= 2 and B % 2 == 0) else 1
    Bb = B // nblk

    # Zero-pad once for the 3x3 conv, flatten spatial, pad lanes, cast bf16.
    xf = jnp.pad(x, ((0, 0), (0, 0), (1, 1), (1, 1))).reshape(B, C, Lin)
    xf = jnp.pad(xf, ((0, 0), (0, 0), (0, Lin_pad - Lin))).astype(jnp.bfloat16)

    valid, mask_flat = _flat_masks(H, W, L_pad)
    inv_count = 1.0 / float(B * H * W)

    # A) conv_extract (im2col deep matmul) + BN1 partial sums
    y, s_y, q_y = _conv3x3_call(xf, params["w1_mat"], params["b1_col"], valid,
                                Wp=Wp, L=L, L_pad=L_pad, Bb=Bb)

    # B) BN1 (folded in-kernel) + ReLU + conv2(1x1) + BN2 partial sums
    z, s_z, q_z = _bn_relu_conv1x1_call(
        y, s_y, q_y, params["g1_col"], params["be1_col"], params["w2_mat"],
        valid, Bb=Bb, inv_count=inv_count)

    # C) BN2 (folded in-kernel) + elu + 1 + border mask
    out_flat = _bn_elu_mask_call(
        z, s_z, q_z, params["g2_col"], params["be2_col"], mask_flat,
        Bb=Bb, inv_count=inv_count)                      # (B, M, L_pad) f32

    # Free-view reshape of the row-padded flat layout; drop junk lanes.
    out = out_flat[:, :, :L_out].reshape(B, out_channels, H, Wp)[:, :, :, :W]
    return out


# ----------------------------------------------------------------------------
# Parameters (deterministic, synthetic) and a plain-JAX reference
# ----------------------------------------------------------------------------
def init_params(key, in_channels, out_channels):
    k = jax.random.split(key, 7)
    w1 = 0.1 * jax.random.normal(k[0], (in_channels, in_channels, 3, 3), jnp.float32)
    b1 = 0.05 * jax.random.normal(k[1], (in_channels,), jnp.float32)
    g1 = 1.0 + 0.1 * jax.random.normal(k[2], (in_channels,), jnp.float32)
    be1 = 0.1 * jax.random.normal(k[3], (in_channels,), jnp.float32)
    w2 = 0.1 * jax.random.normal(k[4], (out_channels, in_channels, 1, 1), jnp.float32)
    g2 = 1.0 + 0.1 * jax.random.normal(k[5], (out_channels,), jnp.float32)
    be2 = 0.1 * jax.random.normal(k[6], (out_channels,), jnp.float32)
    return {
        # raw (PyTorch-layout) copies, used by the reference
        "w1_raw": w1, "b1_raw": b1, "w2_raw": w2,
        "gamma1": g1, "beta1": be1, "gamma2": g2, "beta2": be2,
        # kernel layouts: im2col rows are tap-major, channel-minor; bf16 weights
        "w1_mat": jnp.transpose(w1, (0, 2, 3, 1))
                     .reshape(in_channels, 9 * in_channels).astype(jnp.bfloat16),
        "b1_col": b1.reshape(in_channels, 1),
        "g1_col": g1.reshape(in_channels, 1),
        "be1_col": be1.reshape(in_channels, 1),
        "w2_mat": w2.reshape(out_channels, in_channels).astype(jnp.bfloat16),
        "g2_col": g2.reshape(out_channels, 1),
        "be2_col": be2.reshape(out_channels, 1),
    }


def reference_forward(x, params, out_channels, eps=1e-5):
    if out_channels == 0:
        return jnp.ones((x.shape[0], 1, 1, 1), x.dtype)
    dn = ("NCHW", "OIHW", "NCHW")
    y = jax.lax.conv_general_dilated(x, params["w1_raw"], (1, 1), ((1, 1), (1, 1)),
                                     dimension_numbers=dn)
    y = y + params["b1_raw"][None, :, None, None]
    mean, var = y.mean(axis=(0, 2, 3)), y.var(axis=(0, 2, 3))
    y = ((y - mean[None, :, None, None]) / jnp.sqrt(var[None, :, None, None] + eps)
         * params["gamma1"][None, :, None, None] + params["beta1"][None, :, None, None])
    y = jnp.maximum(y, 0.0)
    z = jax.lax.conv_general_dilated(y, params["w2_raw"], (1, 1), ((0, 0), (0, 0)),
                                     dimension_numbers=dn)
    mean2, var2 = z.mean(axis=(0, 2, 3)), z.var(axis=(0, 2, 3))
    z = ((z - mean2[None, :, None, None]) / jnp.sqrt(var2[None, :, None, None] + eps)
         * params["gamma2"][None, :, None, None] + params["beta2"][None, :, None, None])
    e = jnp.where(z > 0, z + 1.0, jnp.exp(jnp.minimum(z, 0.0)))
    H, W = x.shape[2], x.shape[3]
    base = np.zeros((24, 24), np.float32)
    base[2:-2, 2:-2] = 1.0
    ri = np.minimum((np.arange(H) * 24) // H, 23)
    ci = np.minimum((np.arange(W) * 24) // W, 23)
    return e * jnp.asarray(base[np.ix_(ri, ci)])[None, None]


# ----------------------------------------------------------------------------
if __name__ == "__main__":
    B, C, H, W = 2, 4, 16, 16        # batch, in_channels, spatial
    M = 2                            # out_channels (num attention maps)

    key = jax.random.PRNGKey(0)
    kp, kx = jax.random.split(key)
    params = init_params(kp, C, M)
    x = jax.random.normal(kx, (B, C, H, W), jnp.float32)

    out = attention_map_forward(x, params, out_channels=M)
    out = jax.block_until_ready(out)

    assert out.shape == (B, M, H, W), out.shape
    assert bool(jnp.all(jnp.isfinite(out)))

    ref = reference_forward(x, params, M)
    np.testing.assert_allclose(np.asarray(out), np.asarray(ref),
                               rtol=2e-2, atol=2e-2)
    print("KERNEL_OK")
</pallas_src>

<mosaic_0001>
module attributes {stable_mosaic.version = 11 : i64} {
  func.func @_conv3x3_bn_stats_kernel(%arg0: i32, %arg1: memref<1x4x384xbf16, #tpu.memory_space<vmem>>, %arg2: memref<4x36xbf16, #tpu.memory_space<vmem>>, %arg3: memref<4x1xf32, #tpu.memory_space<vmem>>, %arg4: memref<1x384xf32, #tpu.memory_space<vmem>>, %arg5: memref<1x4x384xbf16, #tpu.memory_space<vmem>>, %arg6: memref<1x4x1xf32, #tpu.memory_space<vmem>>, %arg7: memref<1x4x1xf32, #tpu.memory_space<vmem>>, %arg8: memref<36x384xbf16, #tpu.memory_space<vmem>>) attributes {dimension_semantics = [#tpu.dimension_semantics<parallel>], iteration_bounds = array<i64: 2>, scalar_prefetch = 0 : i64, scratch_operands = 1 : i64, tpu.core_type = #tpu.core_type<tc>, window_params = [{transform_indices = @transform_0, window_bounds = array<i64: 1, 4, 384>}, {pipeline_mode = #tpu.pipeline_mode<synchronous>, transform_indices = @transform_1, window_bounds = array<i64: 4, 36>}, {pipeline_mode = #tpu.pipeline_mode<synchronous>, transform_indices = @transform_2, window_bounds = array<i64: 4, 1>}, {pipeline_mode = #tpu.pipeline_mode<synchronous>, transform_indices = @transform_3, window_bounds = array<i64: 1, 384>}, {transform_indices = @transform_4, window_bounds = array<i64: 1, 4, 384>}, {transform_indices = @transform_5, window_bounds = array<i64: 1, 4, 1>}, {transform_indices = @transform_6, window_bounds = array<i64: 1, 4, 1>}]} {
    %cst = arith.constant 0.000000e+00 : bf16
    %0 = vector.broadcast %cst : bf16 to vector<36x98xbf16>
    %c0 = arith.constant 0 : index
    %c0_0 = arith.constant 0 : index
    %c0_1 = arith.constant 0 : index
    %1 = vector.load %arg1[%c0, %c0_0, %c0_1] : memref<1x4x384xbf16, #tpu.memory_space<vmem>>, vector<1x4x384xbf16>
    %2 = vector.shape_cast %1 : vector<1x4x384xbf16> to vector<4x384xbf16>
    %3 = vector.extract_strided_slice %2 {offsets = [0, 0], sizes = [4, 286], strides = [1, 1]} : vector<4x384xbf16> to vector<4x286xbf16>
    %c0_2 = arith.constant 0 : index
    %c0_3 = arith.constant 0 : index
    %4 = vector.load %arg8[%c0_2, %c0_3] : memref<36x384xbf16, #tpu.memory_space<vmem>>, vector<4x286xbf16>
    tpu.vector_store %arg8[%c0_2, %c0_3], %3 {strides = array<i32>} : memref<36x384xbf16, #tpu.memory_space<vmem>>, vector<4x286xbf16>,
    %5 = vector.extract_strided_slice %2 {offsets = [0, 1], sizes = [4, 286], strides = [1, 1]} : vector<4x384xbf16> to vector<4x286xbf16>
    %c4 = arith.constant 4 : index
    %c0_4 = arith.constant 0 : index
    %6 = vector.load %arg8[%c4, %c0_4] : memref<36x384xbf16, #tpu.memory_space<vmem>>, vector<4x286xbf16>
    tpu.vector_store %arg8[%c4, %c0_4], %5 {strides = array<i32>} : memref<36x384xbf16, #tpu.memory_space<vmem>>, vector<4x286xbf16>,
    %7 = vector.extract_strided_slice %2 {offsets = [0, 2], sizes = [4, 286], strides = [1, 1]} : vector<4x384xbf16> to vector<4x286xbf16>
    %c8 = arith.constant 8 : index
    %c0_5 = arith.constant 0 : index
    %8 = vector.load %arg8[%c8, %c0_5] : memref<36x384xbf16, #tpu.memory_space<vmem>>, vector<4x286xbf16>
    tpu.vector_store %arg8[%c8, %c0_5], %7 {strides = array<i32>} : memref<36x384xbf16, #tpu.memory_space<vmem>>, vector<4x286xbf16>,
    %9 = vector.extract_strided_slice %2 {offsets = [0, 18], sizes = [4, 286], strides = [1, 1]} : vector<4x384xbf16> to vector<4x286xbf16>
    %c12 = arith.constant 12 : index
    %c0_6 = arith.constant 0 : index
    %10 = vector.load %arg8[%c12, %c0_6] : memref<36x384xbf16, #tpu.memory_space<vmem>>, vector<4x286xbf16>
    tpu.vector_store %arg8[%c12, %c0_6], %9 {strides = array<i32>} : memref<36x384xbf16, #tpu.memory_space<vmem>>, vector<4x286xbf16>,
    %11 = vector.extract_strided_slice %2 {offsets = [0, 19], sizes = [4, 286], strides = [1, 1]} : vector<4x384xbf16> to vector<4x286xbf16>
    %c16 = arith.constant 16 : index
    %c0_7 = arith.constant 0 : index
    %12 = vector.load %arg8[%c16, %c0_7] : memref<36x384xbf16, #tpu.memory_space<vmem>>, vector<4x286xbf16>
    tpu.vector_store %arg8[%c16, %c0_7], %11 {strides = array<i32>} : memref<36x384xbf16, #tpu.memory_space<vmem>>, vector<4x286xbf16>,
    %13 = vector.extract_strided_slice %2 {offsets = [0, 20], sizes = [4, 286], strides = [1, 1]} : vector<4x384xbf16> to vector<4x286xbf16>
    %c20 = arith.constant 20 : index
    %c0_8 = arith.constant 0 : index
    %14 = vector.load %arg8[%c20, %c0_8] : memref<36x384xbf16, #tpu.memory_space<vmem>>, vector<4x286xbf16>
    tpu.vector_store %arg8[%c20, %c0_8], %13 {strides = array<i32>} : memref<36x384xbf16, #tpu.memory_space<vmem>>, vector<4x286xbf16>,
    %15 = vector.extract_strided_slice %2 {offsets = [0, 36], sizes = [4, 286], strides = [1, 1]} : vector<4x384xbf16> to vector<4x286xbf16>
    %c24 = arith.constant 24 : index
    %c0_9 = arith.constant 0 : index
    %16 = vector.load %arg8[%c24, %c0_9] : memref<36x384xbf16, #tpu.memory_space<vmem>>, vector<4x286xbf16>
    tpu.vector_store %arg8[%c24, %c0_9], %15 {strides = array<i32>} : memref<36x384xbf16, #tpu.memory_space<vmem>>, vector<4x286xbf16>,
    %17 = vector.extract_strided_slice %2 {offsets = [0, 37], sizes = [4, 286], strides = [1, 1]} : vector<4x384xbf16> to vector<4x286xbf16>
    %c28 = arith.constant 28 : index
    %c0_10 = arith.constant 0 : index
    %18 = vector.load %arg8[%c28, %c0_10] : memref<36x384xbf16, #tpu.memory_space<vmem>>, vector<4x286xbf16>
    tpu.vector_store %arg8[%c28, %c0_10], %17 {strides = array<i32>} : memref<36x384xbf16, #tpu.memory_space<vmem>>, vector<4x286xbf16>,
    %19 = vector.extract_strided_slice %2 {offsets = [0, 38], sizes = [4, 286], strides = [1, 1]} : vector<4x384xbf16> to vector<4x286xbf16>
    %c32 = arith.constant 32 : index
    %c0_11 = arith.constant 0 : index
    %20 = vector.load %arg8[%c32, %c0_11] : memref<36x384xbf16, #tpu.memory_space<vmem>>, vector<4x286xbf16>
    tpu.vector_store %arg8[%c32, %c0_11], %19 {strides = array<i32>} : memref<36x384xbf16, #tpu.memory_space<vmem>>, vector<4x286xbf16>,
    %c0_12 = arith.constant 0 : index
    %c286 = arith.constant 286 : index
    %21 = vector.load %arg8[%c0_12, %c286] : memref<36x384xbf16, #tpu.memory_space<vmem>>, vector<36x98xbf16>
    tpu.vector_store %arg8[%c0_12, %c286], %0 {strides = array<i32>} : memref<36x384xbf16, #tpu.memory_space<vmem>>, vector<36x98xbf16>,
    %c0_13 = arith.constant 0 : index
    %c0_14 = arith.constant 0 : index
    %22 = vector.load %arg2[%c0_13, %c0_14] : memref<4x36xbf16, #tpu.memory_space<vmem>>, vector<4x36xbf16>
    %c0_15 = arith.constant 0 : index
    %c0_16 = arith.constant 0 : index
    %23 = vector.load %arg8[%c0_15, %c0_16] : memref<36x384xbf16, #tpu.memory_space<vmem>>, vector<36x384xbf16>
    %cst_17 = arith.constant dense<0.000000e+00> : vector<4x384xf32>
    %24 = tpu.matmul %22, %23, %cst_17 {dimension_numbers = #tpu.dot_dimension_numbers<[1], [0], [0], [1], [0, 0, 1, 1], [], []>} : vector<4x36xbf16>, vector<36x384xbf16>, vector<4x384xf32> -> vector<4x384xf32>
    %c0_18 = arith.constant 0 : index
    %c0_19 = arith.constant 0 : index
    %25 = vector.load %arg3[%c0_18, %c0_19] : memref<4x1xf32, #tpu.memory_space<vmem>>, vector<4x1xf32>
    %26 = vector.broadcast %25 : vector<4x1xf32> to vector<4x384xf32>
    %27 = arith.addf %24, %26 : vector<4x384xf32>
    %c0_20 = arith.constant 0 : index
    %c0_21 = arith.constant 0 : index
    %28 = vector.load %arg4[%c0_20, %c0_21] : memref<1x384xf32, #tpu.memory_space<vmem>>, vector<1x384xf32>
    %cst_22 = arith.constant 0.000000e+00 : f32
    %29 = vector.broadcast %cst_22 : f32 to vector<4x1xf32>
    %cst_23 = arith.constant 0.000000e+00 : f32
    %30 = vector.broadcast %cst_23 : f32 to vector<4x1xf32>
    %31 = arith.truncf %27 : vector<4x384xf32> to vector<4x384xbf16>
    %c0_24 = arith.constant 0 : index
    %c0_25 = arith.constant 0 : index
    %c0_26 = arith.constant 0 : index
    %32 = vector.load %arg5[%c0_24, %c0_25, %c0_26] : memref<1x4x384xbf16, #tpu.memory_space<vmem>>, vector<1x4x384xbf16>
    %33 = vector.shape_cast %32 : vector<1x4x384xbf16> to vector<4x384xbf16>
    %34 = vector.shape_cast %31 : vector<4x384xbf16> to vector<1x4x384xbf16>
    tpu.vector_store %arg5[%c0_24, %c0_25, %c0_26], %34 {strides = array<i32>} : memref<1x4x384xbf16, #tpu.memory_space<vmem>>, vector<1x4x384xbf16>,
    %cst_27 = arith.constant 0.000000e+00 : f32
    %35 = vector.broadcast %cst_27 : f32 to vector<1x384xf32>
    %36 = arith.cmpf ogt, %28, %35 : vector<1x384xf32>
    %cst_28 = arith.constant 0.000000e+00 : f32
    %37 = vector.shape_cast %36 : vector<1x384xi1> to vector<1x384xi1>
    %38 = vector.broadcast %37 : vector<1x384xi1> to vector<4x384xi1>
    %39 = vector.broadcast %cst_28 : f32 to vector<4x384xf32>
    %40 = arith.select %38, %27, %39 : vector<4x384xi1>, vector<4x384xf32>
    %cst_29 = arith.constant dense<0.000000e+00> : vector<4xf32>
    %41 = vector.multi_reduction <add>, %40, %cst_29 [1] : vector<4x384xf32> to vector<4xf32>
    %42 = vector.shape_cast %41 : vector<4xf32> to vector<4x1xf32>
    %43 = arith.addf %29, %42 : vector<4x1xf32>
    %44 = arith.mulf %40, %40 : vector<4x384xf32>
    %cst_30 = arith.constant dense<0.000000e+00> : vector<4xf32>
    %45 = vector.multi_reduction <add>, %44, %cst_30 [1] : vector<4x384xf32> to vector<4xf32>
    %46 = vector.shape_cast %45 : vector<4xf32> to vector<4x1xf32>
    %47 = arith.addf %30, %46 : vector<4x1xf32>
    %48 = vector.shape_cast %43 : vector<4x1xf32> to vector<1x4x1xf32>
    %c0_31 = arith.constant 0 : index
    %c0_32 = arith.constant 0 : index
    %c0_33 = arith.constant 0 : index
    %49 = vector.load %arg6[%c0_31, %c0_32, %c0_33] : memref<1x4x1xf32, #tpu.memory_space<vmem>>, vector<1x4x1xf32>
    tpu.vector_store %arg6[%c0_31, %c0_32, %c0_33], %48 {strides = array<i32>} : memref<1x4x1xf32, #tpu.memory_space<vmem>>, vector<1x4x1xf32>,
    %50 = vector.shape_cast %47 : vector<4x1xf32> to vector<1x4x1xf32>
    %c0_34 = arith.constant 0 : index
    %c0_35 = arith.constant 0 : index
    %c0_36 = arith.constant 0 : index
    %51 = vector.load %arg7[%c0_34, %c0_35, %c0_36] : memref<1x4x1xf32, #tpu.memory_space<vmem>>, vector<1x4x1xf32>
    tpu.vector_store %arg7[%c0_34, %c0_35, %c0_36], %50 {strides = array<i32>} : memref<1x4x1xf32, #tpu.memory_space<vmem>>, vector<1x4x1xf32>,
    return
  }
  func.func @transform_0(%arg0: i32) -> (i32, i32, i32) {
    %c0_i32 = arith.constant 0 : i32
    %c0_i32_0 = arith.constant 0 : i32
    %c0_i32_1 = arith.constant 0 : i32
    return %arg0, %c0_i32, %c0_i32_0 : i32, i32, i32
  }
  func.func @transform_1(%arg0: i32) -> (i32, i32) {
    %c0_i32 = arith.constant 0 : i32
    %c0_i32_0 = arith.constant 0 : i32
    %c0_i32_1 = arith.constant 0 : i32
    return %c0_i32, %c0_i32_0 : i32, i32
  }
  func.func @transform_2(%arg0: i32) -> (i32, i32) {
    %c0_i32 = arith.constant 0 : i32
    %c0_i32_0 = arith.constant 0 : i32
    %c0_i32_1 = arith.constant 0 : i32
    return %c0_i32, %c0_i32_0 : i32, i32
  }
  func.func @transform_3(%arg0: i32) -> (i32, i32) {
    %c0_i32 = arith.constant 0 : i32
    %c0_i32_0 = arith.constant 0 : i32
    %c0_i32_1 = arith.constant 0 : i32
    return %c0_i32, %c0_i32_0 : i32, i32
  }
  func.func @transform_4(%arg0: i32) -> (i32, i32, i32) {
    %c0_i32 = arith.constant 0 : i32
    %c0_i32_0 = arith.constant 0 : i32
    %c0_i32_1 = arith.constant 0 : i32
    return %arg0, %c0_i32, %c0_i32_0 : i32, i32, i32
  }
  func.func @transform_5(%arg0: i32) -> (i32, i32, i32) {
    %c0_i32 = arith.constant 0 : i32
    %c0_i32_0 = arith.constant 0 : i32
    %c0_i32_1 = arith.constant 0 : i32
    return %arg0, %c0_i32, %c0_i32_0 : i32, i32, i32
  }
  func.func @transform_6(%arg0: i32) -> (i32, i32, i32) {
    %c0_i32 = arith.constant 0 : i32
    %c0_i32_0 = arith.constant 0 : i32
    %c0_i32_1 = arith.constant 0 : i32
    return %arg0, %c0_i32, %c0_i32_0 : i32, i32, i32
  }
}

module attributes {stable_mosaic.version = 11 : i64} {
  func.func @_bn_relu_conv1x1_stats_kernel(%arg0: i32, %arg1: memref<1x4x384xbf16, #tpu.memory_space<vmem>>, %arg2: memref<2x4x1xf32, #tpu.memory_space<vmem>>, %arg3: memref<2x4x1xf32, #tpu.memory_space<vmem>>, %arg4: memref<4x1xf32, #tpu.memory_space<vmem>>, %arg5: memref<4x1xf32, #tpu.memory_space<vmem>>, %arg6: memref<2x4xbf16, #tpu.memory_space<vmem>>, %arg7: memref<1x384xf32, #tpu.memory_space<vmem>>, %arg8: memref<1x2x384xbf16, #tpu.memory_space<vmem>>, %arg9: memref<1x2x1xf32, #tpu.memory_space<vmem>>, %arg10: memref<1x2x1xf32, #tpu.memory_space<vmem>>) attributes {dimension_semantics = [#tpu.dimension_semantics<parallel>], iteration_bounds = array<i64: 2>, scalar_prefetch = 0 : i64, scratch_operands = 0 : i64, tpu.core_type = #tpu.core_type<tc>, window_params = [{transform_indices = @transform_0, window_bounds = array<i64: 1, 4, 384>}, {pipeline_mode = #tpu.pipeline_mode<synchronous>, transform_indices = @transform_1, window_bounds = array<i64: 2, 4, 1>}, {pipeline_mode = #tpu.pipeline_mode<synchronous>, transform_indices = @transform_2, window_bounds = array<i64: 2, 4, 1>}, {pipeline_mode = #tpu.pipeline_mode<synchronous>, transform_indices = @transform_3, window_bounds = array<i64: 4, 1>}, {pipeline_mode = #tpu.pipeline_mode<synchronous>, transform_indices = @transform_4, window_bounds = array<i64: 4, 1>}, {pipeline_mode = #tpu.pipeline_mode<synchronous>, transform_indices = @transform_5, window_bounds = array<i64: 2, 4>}, {pipeline_mode = #tpu.pipeline_mode<synchronous>, transform_indices = @transform_6, window_bounds = array<i64: 1, 384>}, {transform_indices = @transform_7, window_bounds = array<i64: 1, 2, 384>}, {transform_indices = @transform_8, window_bounds = array<i64: 1, 2, 1>}, {transform_indices = @transform_9, window_bounds = array<i64: 1, 2, 1>}]} {
    %c0 = arith.constant 0 : index
    %c0_0 = arith.constant 0 : index
    %c0_1 = arith.constant 0 : index
    %0 = vector.load %arg2[%c0, %c0_0, %c0_1] : memref<2x4x1xf32, #tpu.memory_space<vmem>>, vector<2x4x1xf32>
    %cst = arith.constant dense<0.000000e+00> : vector<4x1xf32>
    %1 = vector.multi_reduction <add>, %0, %cst [0] : vector<2x4x1xf32> to vector<4x1xf32>
    %c0_2 = arith.constant 0 : index
    %c0_3 = arith.constant 0 : index
    %c0_4 = arith.constant 0 : index
    %2 = vector.load %arg3[%c0_2, %c0_3, %c0_4] : memref<2x4x1xf32, #tpu.memory_space<vmem>>, vector<2x4x1xf32>
    %cst_5 = arith.constant dense<0.000000e+00> : vector<4x1xf32>
    %3 = vector.multi_reduction <add>, %2, %cst_5 [0] : vector<2x4x1xf32> to vector<4x1xf32>
    %cst_6 = arith.constant 0.001953125 : f32
    %4 = vector.broadcast %cst_6 : f32 to vector<4x1xf32>
    %5 = arith.mulf %1, %4 : vector<4x1xf32>
    %cst_7 = arith.constant 0.001953125 : f32
    %6 = vector.broadcast %cst_7 : f32 to vector<4x1xf32>
    %7 = arith.mulf %3, %6 : vector<4x1xf32>
    %8 = arith.mulf %5, %5 : vector<4x1xf32>
    %9 = arith.subf %7, %8 : vector<4x1xf32>
    %cst_8 = arith.constant 0.000000e+00 : f32
    %10 = vector.broadcast %cst_8 : f32 to vector<4x1xf32>
    %11 = arith.maximumf %9, %10 : vector<4x1xf32>
    %c0_9 = arith.constant 0 : index
    %c0_10 = arith.constant 0 : index
    %12 = vector.load %arg4[%c0_9, %c0_10] : memref<4x1xf32, #tpu.memory_space<vmem>>, vector<4x1xf32>
    %cst_11 = arith.constant 9.99999974E-6 : f32
    %13 = vector.broadcast %cst_11 : f32 to vector<4x1xf32>
    %14 = arith.addf %11, %13 : vector<4x1xf32>
    %15 = math.rsqrt %14 : vector<4x1xf32>
    %16 = arith.mulf %12, %15 : vector<4x1xf32>
    %c0_12 = arith.constant 0 : index
    %c0_13 = arith.constant 0 : index
    %17 = vector.load %arg5[%c0_12, %c0_13] : memref<4x1xf32, #tpu.memory_space<vmem>>, vector<4x1xf32>
    %18 = arith.mulf %5, %16 : vector<4x1xf32>
    %19 = arith.subf %17, %18 : vector<4x1xf32>
    %c0_14 = arith.constant 0 : index
    %c0_15 = arith.constant 0 : index
    %20 = vector.load %arg7[%c0_14, %c0_15] : memref<1x384xf32, #tpu.memory_space<vmem>>, vector<1x384xf32>
    %cst_16 = arith.constant 0.000000e+00 : f32
    %21 = vector.broadcast %cst_16 : f32 to vector<2x1xf32>
    %cst_17 = arith.constant 0.000000e+00 : f32
    %22 = vector.broadcast %cst_17 : f32 to vector<2x1xf32>
    %c0_18 = arith.constant 0 : index
    %c0_19 = arith.constant 0 : index
    %c0_20 = arith.constant 0 : index
    %23 = vector.load %arg1[%c0_18, %c0_19, %c0_20] : memref<1x4x384xbf16, #tpu.memory_space<vmem>>, vector<1x4x384xbf16>
    %24 = vector.shape_cast %23 : vector<1x4x384xbf16> to vector<4x384xbf16>
    %25 = arith.extf %24 : vector<4x384xbf16> to vector<4x384xf32>
    %26 = vector.broadcast %16 : vector<4x1xf32> to vector<4x384xf32>
    %27 = arith.mulf %25, %26 : vector<4x384xf32>
    %28 = vector.broadcast %19 : vector<4x1xf32> to vector<4x384xf32>
    %29 = arith.addf %27, %28 : vector<4x384xf32>
    %cst_21 = arith.constant 0.000000e+00 : f32
    %30 = vector.broadcast %cst_21 : f32 to vector<4x384xf32>
    %31 = arith.maximumf %29, %30 : vector<4x384xf32>
    %c0_22 = arith.constant 0 : index
    %c0_23 = arith.constant 0 : index
    %32 = vector.load %arg6[%c0_22, %c0_23] : memref<2x4xbf16, #tpu.memory_space<vmem>>, vector<2x4xbf16>
    %33 = arith.truncf %31 : vector<4x384xf32> to vector<4x384xbf16>
    %cst_24 = arith.constant dense<0.000000e+00> : vector<2x384xf32>
    %34 = tpu.matmul %32, %33, %cst_24 {dimension_numbers = #tpu.dot_dimension_numbers<[1], [0], [0], [1], [0, 0, 1, 1], [], []>} : vector<2x4xbf16>, vector<4x384xbf16>, vector<2x384xf32> -> vector<2x384xf32>
    %35 = arith.truncf %34 : vector<2x384xf32> to vector<2x384xbf16>
    %c0_25 = arith.constant 0 : index
    %c0_26 = arith.constant 0 : index
    %c0_27 = arith.constant 0 : index
    %36 = vector.load %arg8[%c0_25, %c0_26, %c0_27] : memref<1x2x384xbf16, #tpu.memory_space<vmem>>, vector<1x2x384xbf16>
    %37 = vector.shape_cast %36 : vector<1x2x384xbf16> to vector<2x384xbf16>
    %38 = vector.shape_cast %35 : vector<2x384xbf16> to vector<1x2x384xbf16>
    tpu.vector_store %arg8[%c0_25, %c0_26, %c0_27], %38 {strides = array<i32>} : memref<1x2x384xbf16, #tpu.memory_space<vmem>>, vector<1x2x384xbf16>,
    %cst_28 = arith.constant 0.000000e+00 : f32
    %39 = vector.broadcast %cst_28 : f32 to vector<1x384xf32>
    %40 = arith.cmpf ogt, %20, %39 : vector<1x384xf32>
    %cst_29 = arith.constant 0.000000e+00 : f32
    %41 = vector.shape_cast %40 : vector<1x384xi1> to vector<1x384xi1>
    %42 = vector.broadcast %41 : vector<1x384xi1> to vector<2x384xi1>
    %43 = vector.broadcast %cst_29 : f32 to vector<2x384xf32>
    %44 = arith.select %42, %34, %43 : vector<2x384xi1>, vector<2x384xf32>
    %cst_30 = arith.constant dense<0.000000e+00> : vector<2xf32>
    %45 = vector.multi_reduction <add>, %44, %cst_30 [1] : vector<2x384xf32> to vector<2xf32>
    %46 = vector.shape_cast %45 : vector<2xf32> to vector<2x1xf32>
    %47 = arith.addf %21, %46 : vector<2x1xf32>
    %48 = arith.mulf %44, %44 : vector<2x384xf32>
    %cst_31 = arith.constant dense<0.000000e+00> : vector<2xf32>
    %49 = vector.multi_reduction <add>, %48, %cst_31 [1] : vector<2x384xf32> to vector<2xf32>
    %50 = vector.shape_cast %49 : vector<2xf32> to vector<2x1xf32>
    %51 = arith.addf %22, %50 : vector<2x1xf32>
    %52 = vector.shape_cast %47 : vector<2x1xf32> to vector<1x2x1xf32>
    %c0_32 = arith.constant 0 : index
    %c0_33 = arith.constant 0 : index
    %c0_34 = arith.constant 0 : index
    %53 = vector.load %arg9[%c0_32, %c0_33, %c0_34] : memref<1x2x1xf32, #tpu.memory_space<vmem>>, vector<1x2x1xf32>
    tpu.vector_store %arg9[%c0_32, %c0_33, %c0_34], %52 {strides = array<i32>} : memref<1x2x1xf32, #tpu.memory_space<vmem>>, vector<1x2x1xf32>,
    %54 = vector.shape_cast %51 : vector<2x1xf32> to vector<1x2x1xf32>
    %c0_35 = arith.constant 0 : index
    %c0_36 = arith.constant 0 : index
    %c0_37 = arith.constant 0 : index
    %55 = vector.load %arg10[%c0_35, %c0_36, %c0_37] : memref<1x2x1xf32, #tpu.memory_space<vmem>>, vector<1x2x1xf32>
    tpu.vector_store %arg10[%c0_35, %c0_36, %c0_37], %54 {strides = array<i32>} : memref<1x2x1xf32, #tpu.memory_space<vmem>>, vector<1x2x1xf32>,
    return
  }
  func.func @transform_0(%arg0: i32) -> (i32, i32, i32) {
    %c0_i32 = arith.constant 0 : i32
    %c0_i32_0 = arith.constant 0 : i32
    %c0_i32_1 = arith.constant 0 : i32
    return %arg0, %c0_i32, %c0_i32_0 : i32, i32, i32
  }
  func.func @transform_1(%arg0: i32) -> (i32, i32, i32) {
    %c0_i32 = arith.constant 0 : i32
    %c0_i32_0 = arith.constant 0 : i32
    %c0_i32_1 = arith.constant 0 : i32
    %c0_i32_2 = arith.constant 0 : i32
    return %c0_i32, %c0_i32_0, %c0_i32_1 : i32, i32, i32
  }
  func.func @transform_2(%arg0: i32) -> (i32, i32, i32) {
    %c0_i32 = arith.constant 0 : i32
    %c0_i32_0 = arith.constant 0 : i32
    %c0_i32_1 = arith.constant 0 : i32
    %c0_i32_2 = arith.constant 0 : i32
    return %c0_i32, %c0_i32_0, %c0_i32_1 : i32, i32, i32
  }
  func.func @transform_3(%arg0: i32) -> (i32, i32) {
    %c0_i32 = arith.constant 0 : i32
    %c0_i32_0 = arith.constant 0 : i32
    %c0_i32_1 = arith.constant 0 : i32
    return %c0_i32, %c0_i32_0 : i32, i32
  }
  func.func @transform_4(%arg0: i32) -> (i32, i32) {
    %c0_i32 = arith.constant 0 : i32
    %c0_i32_0 = arith.constant 0 : i32
    %c0_i32_1 = arith.constant 0 : i32
    return %c0_i32, %c0_i32_0 : i32, i32
  }
  func.func @transform_5(%arg0: i32) -> (i32, i32) {
    %c0_i32 = arith.constant 0 : i32
    %c0_i32_0 = arith.constant 0 : i32
    %c0_i32_1 = arith.constant 0 : i32
    return %c0_i32, %c0_i32_0 : i32, i32
  }
  func.func @transform_6(%arg0: i32) -> (i32, i32) {
    %c0_i32 = arith.constant 0 : i32
    %c0_i32_0 = arith.constant 0 : i32
    %c0_i32_1 = arith.constant 0 : i32
    return %c0_i32, %c0_i32_0 : i32, i32
  }
  func.func @transform_7(%arg0: i32) -> (i32, i32, i32) {
    %c0_i32 = arith.constant 0 : i32
    %c0_i32_0 = arith.constant 0 : i32
    %c0_i32_1 = arith.constant 0 : i32
    return %arg0, %c0_i32, %c0_i32_0 : i32, i32, i32
  }
  func.func @transform_8(%arg0: i32) -> (i32, i32, i32) {
    %c0_i32 = arith.constant 0 : i32
    %c0_i32_0 = arith.constant 0 : i32
    %c0_i32_1 = arith.constant 0 : i32
    return %arg0, %c0_i32, %c0_i32_0 : i32, i32, i32
  }
  func.func @transform_9(%arg0: i32) -> (i32, i32, i32) {
    %c0_i32 = arith.constant 0 : i32
    %c0_i32_0 = arith.constant 0 : i32
    %c0_i32_1 = arith.constant 0 : i32
    return %arg0, %c0_i32, %c0_i32_0 : i32, i32, i32
  }
}

module attributes {stable_mosaic.version = 11 : i64} {
  func.func @_bn_elu_mask_kernel(%arg0: i32, %arg1: memref<1x2x384xbf16, #tpu.memory_space<vmem>>, %arg2: memref<2x2x1xf32, #tpu.memory_space<vmem>>, %arg3: memref<2x2x1xf32, #tpu.memory_space<vmem>>, %arg4: memref<2x1xf32, #tpu.memory_space<vmem>>, %arg5: memref<2x1xf32, #tpu.memory_space<vmem>>, %arg6: memref<1x384xf32, #tpu.memory_space<vmem>>, %arg7: memref<1x2x384xf32, #tpu.memory_space<vmem>>) attributes {dimension_semantics = [#tpu.dimension_semantics<parallel>], iteration_bounds = array<i64: 2>, scalar_prefetch = 0 : i64, scratch_operands = 0 : i64, tpu.core_type = #tpu.core_type<tc>, window_params = [{transform_indices = @transform_0, window_bounds = array<i64: 1, 2, 384>}, {pipeline_mode = #tpu.pipeline_mode<synchronous>, transform_indices = @transform_1, window_bounds = array<i64: 2, 2, 1>}, {pipeline_mode = #tpu.pipeline_mode<synchronous>, transform_indices = @transform_2, window_bounds = array<i64: 2, 2, 1>}, {pipeline_mode = #tpu.pipeline_mode<synchronous>, transform_indices = @transform_3, window_bounds = array<i64: 2, 1>}, {pipeline_mode = #tpu.pipeline_mode<synchronous>, transform_indices = @transform_4, window_bounds = array<i64: 2, 1>}, {pipeline_mode = #tpu.pipeline_mode<synchronous>, transform_indices = @transform_5, window_bounds = array<i64: 1, 384>}, {transform_indices = @transform_6, window_bounds = array<i64: 1, 2, 384>}]} {
    %c0 = arith.constant 0 : index
    %c0_0 = arith.constant 0 : index
    %c0_1 = arith.constant 0 : index
    %0 = vector.load %arg2[%c0, %c0_0, %c0_1] : memref<2x2x1xf32, #tpu.memory_space<vmem>>, vector<2x2x1xf32>
    %cst = arith.constant dense<0.000000e+00> : vector<2x1xf32>
    %1 = vector.multi_reduction <add>, %0, %cst [0] : vector<2x2x1xf32> to vector<2x1xf32>
    %c0_2 = arith.constant 0 : index
    %c0_3 = arith.constant 0 : index
    %c0_4 = arith.constant 0 : index
    %2 = vector.load %arg3[%c0_2, %c0_3, %c0_4] : memref<2x2x1xf32, #tpu.memory_space<vmem>>, vector<2x2x1xf32>
    %cst_5 = arith.constant dense<0.000000e+00> : vector<2x1xf32>
    %3 = vector.multi_reduction <add>, %2, %cst_5 [0] : vector<2x2x1xf32> to vector<2x1xf32>
    %cst_6 = arith.constant 0.001953125 : f32
    %4 = vector.broadcast %cst_6 : f32 to vector<2x1xf32>
    %5 = arith.mulf %1, %4 : vector<2x1xf32>
    %cst_7 = arith.constant 0.001953125 : f32
    %6 = vector.broadcast %cst_7 : f32 to vector<2x1xf32>
    %7 = arith.mulf %3, %6 : vector<2x1xf32>
    %8 = arith.mulf %5, %5 : vector<2x1xf32>
    %9 = arith.subf %7, %8 : vector<2x1xf32>
    %cst_8 = arith.constant 0.000000e+00 : f32
    %10 = vector.broadcast %cst_8 : f32 to vector<2x1xf32>
    %11 = arith.maximumf %9, %10 : vector<2x1xf32>
    %c0_9 = arith.constant 0 : index
    %c0_10 = arith.constant 0 : index
    %12 = vector.load %arg4[%c0_9, %c0_10] : memref<2x1xf32, #tpu.memory_space<vmem>>, vector<2x1xf32>
    %cst_11 = arith.constant 9.99999974E-6 : f32
    %13 = vector.broadcast %cst_11 : f32 to vector<2x1xf32>
    %14 = arith.addf %11, %13 : vector<2x1xf32>
    %15 = math.rsqrt %14 : vector<2x1xf32>
    %16 = arith.mulf %12, %15 : vector<2x1xf32>
    %c0_12 = arith.constant 0 : index
    %c0_13 = arith.constant 0 : index
    %17 = vector.load %arg5[%c0_12, %c0_13] : memref<2x1xf32, #tpu.memory_space<vmem>>, vector<2x1xf32>
    %18 = arith.mulf %5, %16 : vector<2x1xf32>
    %19 = arith.subf %17, %18 : vector<2x1xf32>
    %c0_14 = arith.constant 0 : index
    %c0_15 = arith.constant 0 : index
    %20 = vector.load %arg6[%c0_14, %c0_15] : memref<1x384xf32, #tpu.memory_space<vmem>>, vector<1x384xf32>
    %c0_16 = arith.constant 0 : index
    %c0_17 = arith.constant 0 : index
    %c0_18 = arith.constant 0 : index
    %21 = vector.load %arg1[%c0_16, %c0_17, %c0_18] : memref<1x2x384xbf16, #tpu.memory_space<vmem>>, vector<1x2x384xbf16>
    %22 = vector.shape_cast %21 : vector<1x2x384xbf16> to vector<2x384xbf16>
    %23 = arith.extf %22 : vector<2x384xbf16> to vector<2x384xf32>
    %24 = vector.broadcast %16 : vector<2x1xf32> to vector<2x384xf32>
    %25 = arith.mulf %23, %24 : vector<2x384xf32>
    %26 = vector.broadcast %19 : vector<2x1xf32> to vector<2x384xf32>
    %27 = arith.addf %25, %26 : vector<2x384xf32>
    %cst_19 = arith.constant 0.000000e+00 : f32
    %28 = vector.broadcast %cst_19 : f32 to vector<2x384xf32>
    %29 = arith.cmpf ogt, %27, %28 : vector<2x384xf32>
    %cst_20 = arith.constant 1.000000e+00 : f32
    %30 = vector.broadcast %cst_20 : f32 to vector<2x384xf32>
    %31 = arith.addf %27, %30 : vector<2x384xf32>
    %cst_21 = arith.constant 0.000000e+00 : f32
    %32 = vector.broadcast %cst_21 : f32 to vector<2x384xf32>
    %33 = arith.minimumf %27, %32 : vector<2x384xf32>
    %34 = math.exp %33 : vector<2x384xf32>
    %35 = arith.select %29, %31, %34 : vector<2x384xi1>, vector<2x384xf32>
    %36 = vector.broadcast %20 : vector<1x384xf32> to vector<2x384xf32>
    %37 = arith.mulf %35, %36 : vector<2x384xf32>
    %c0_22 = arith.constant 0 : index
    %c0_23 = arith.constant 0 : index
    %c0_24 = arith.constant 0 : index
    %38 = vector.load %arg7[%c0_22, %c0_23, %c0_24] : memref<1x2x384xf32, #tpu.memory_space<vmem>>, vector<1x2x384xf32>
    %39 = vector.shape_cast %38 : vector<1x2x384xf32> to vector<2x384xf32>
    %40 = vector.shape_cast %37 : vector<2x384xf32> to vector<1x2x384xf32>
    tpu.vector_store %arg7[%c0_22, %c0_23, %c0_24], %40 {strides = array<i32>} : memref<1x2x384xf32, #tpu.memory_space<vmem>>, vector<1x2x384xf32>,
    return
  }
  func.func @transform_0(%arg0: i32) -> (i32, i32, i32) {
    %c0_i32 = arith.constant 0 : i32
    %c0_i32_0 = arith.constant 0 : i32
    %c0_i32_1 = arith.constant 0 : i32
    return %arg0, %c0_i32, %c0_i32_0 : i32, i32, i32
  }
  func.func @transform_1(%arg0: i32) -> (i32, i32, i32) {
    %c0_i32 = arith.constant 0 : i32
    %c0_i32_0 = arith.constant 0 : i32
    %c0_i32_1 = arith.constant 0 : i32
    %c0_i32_2 = arith.constant 0 : i32
    return %c0_i32, %c0_i32_0, %c0_i32_1 : i32, i32, i32
  }
  func.func @transform_2(%arg0: i32) -> (i32, i32, i32) {
    %c0_i32 = arith.constant 0 : i32
    %c0_i32_0 = arith.constant 0 : i32
    %c0_i32_1 = arith.constant 0 : i32
    %c0_i32_2 = arith.constant 0 : i32
    return %c0_i32, %c0_i32_0, %c0_i32_1 : i32, i32, i32
  }
  func.func @transform_3(%arg0: i32) -> (i32, i32) {
    %c0_i32 = arith.constant 0 : i32
    %c0_i32_0 = arith.constant 0 : i32
    %c0_i32_1 = arith.constant 0 : i32
    return %c0_i32, %c0_i32_0 : i32, i32
  }
  func.func @transform_4(%arg0: i32) -> (i32, i32) {
    %c0_i32 = arith.constant 0 : i32
    %c0_i32_0 = arith.constant 0 : i32
    %c0_i32_1 = arith.constant 0 : i32
    return %c0_i32, %c0_i32_0 : i32, i32
  }
  func.func @transform_5(%arg0: i32) -> (i32, i32) {
    %c0_i32 = arith.constant 0 : i32
    %c0_i32_0 = arith.constant 0 : i32
    %c0_i32_1 = arith.constant 0 : i32
    return %c0_i32, %c0_i32_0 : i32, i32
  }
  func.func @transform_6(%arg0: i32) -> (i32, i32, i32) {
    %c0_i32 = arith.constant 0 : i32
    %c0_i32_0 = arith.constant 0 : i32
    %c0_i32_1 = arith.constant 0 : i32
    return %arg0, %c0_i32, %c0_i32_0 : i32, i32, i32
  }
}

</mosaic_0001>

<bundles_post_ra>
// kernel: attention_map_forward.5
= control target key start
LH: loop header
LB: loop body
LE: loop exit
PB: predicated region body
PF: predicated region fallthrough
CT: control target
= control target key end

     0   :  { %s466_s21 = smov 0   ;;  %s512_s0 = inlined_call_operand.vmem [shape: bf16[2,2,384], index: 0, kind: input, shape index: {}]   ;;  %s513_s1 = inlined_call_operand.vmem [shape: f32[2,2,1], index: 1, kind: input, shape index: {}]   ;;  %s514_s2 = inlined_call_operand.vmem [shape: f32[2,2,1], index: 2, kind: input, shape index: {}]   ;;  %s515_s3 = inlined_call_operand.vmem [shape: f32[2,1], index: 3, kind: input, shape index: {}]   ;;  %s516_s4 = inlined_call_operand.vmem [shape: f32[2,1], index: 4, kind: input, shape index: {}]   ;;  %s517_s5 = inlined_call_operand.vmem [shape: f32[1,384], index: 5, kind: input, shape index: {}]   ;;  %s518_s6 = inlined_call_operand.vmem [shape: f32[2,2,384], index: 6, kind: output, shape index: {}]  }
   0x1 LB: > { %s394_s22 = sadd.s32 4294967295, %s426_s21   ;;  %p398_p0 = scmp.ge.s32.totalorder %s426_s21, 1  ;;  %s426_s21 = sphi %s466_s21, %s16_s21  }
   0x2   : > { %p211_p1 = scmp.lt.s32.totalorder %s426_s21, 3 }
   0x4   : > { %p212_p2 = pnand %p398_p0, %p211_p1 }
   0x5   : > { %v249_v0 = vld [vmem:[%s513_s1] sm:$0x3] (!%p212_p2)  ;;  %v250_v1 = vld [vmem:[%s513_s1 + $0x2] sm:$0x3] (!%p212_p2)  ;;  %vm251_vm0 = vcmask (!%p212_p2), 1024   ;;  %v428_v2 = vmov (!%p212_p2), 0   ;;  %v282_v25 = vlaneseq (!%p212_p2) }
   0x6   : > { %215 = sbr.rel (%p212_p2) target bundleno = 187 (0xbb), region = 44  ;;  %415 = vset.pattern.permute.xlu0 (!%p212_p2), %v428_v2  ;;  %v252_v3 = vsel (!%p212_p2), %vm251_vm0, %v249_v0, 0.0  ;;  %v253_v4 = vsel (!%p212_p2), %vm251_vm0, %v250_v1, 0.0  ;;  %v255_v5 = vld [vmem:[%s514_s2] sm:$0x3] (!%p212_p2)  ;;  %p240_p3 = scmp.lt.s32.totalorder (!%p212_p2), %s394_s22, 1 }
   0x7   : > { %v256_v6 = vld [vmem:[%s514_s2 + $0x2] sm:$0x3] (!%p212_p2)  ;;  %v254_v7 = vadd.f32 (!%p212_p2), %v253_v4, %v252_v3  ;;  %v257_v8 = vsel (!%p212_p2), %vm251_vm0, %v255_v5, 0.0  ;;  %v265_v17 = vld [vmem:[%s515_s3] sm:$0x3] (!%p212_p2)  ;;  %v283_v27 = vshrl.u32 (!%p212_p2), %v282_v25, 7 }
   0x8   : > { %v258_v9 = vsel (!%p212_p2), %vm251_vm0, %v256_v6, 0.0  ;;  %v269_v20 = vld [vmem:[%s516_s4] sm:$0x3] (!%p212_p2)  ;;  %v429_v23 = vmov (!%p212_p2), 269488144  }
   0x9   : > { %v259_v10 = vadd.f32 (!%p212_p2), %v258_v9, %v257_v8  ;;  %v260_v11 = vmul.f32 (!%p212_p2), 0.001953125, %v254_v7  ;;  %v280_v24 = vunpack.c.l.s4 (!%p212_p2), %v429_v23  ;;  %v310_v33 = vsub.s32 (!%p212_p2), 0, %v283_v27  ;;  %v272_v40 = vld [vmem:[%s517_s5] sm:$0x7] (!%p212_p2) }
   0xa   : > { %v314_v36 = vsub.s32 (!%p212_p2), 1, %v283_v27  ;;  %v430_v37 = vmov (!%p212_p2), 1983009808   ;;  %v318_v42 = vsub.s32 (!%p212_p2), 2, %v283_v27 }
   0xb   : > { %v261_v12 = vmul.f32 (!%p212_p2), 0.001953125, %v259_v10  ;;  %v262_v13 = vmul.f32 (!%p212_p2), %v260_v11, %v260_v11  ;;  %v281_v26 = vunpack.c.0.s8 (!%p212_p2), %v280_v24  ;;  %v322_v38 = vunpack.c.l.s4 (!%p212_p2), %v430_v37 }
   0xc   : > { %v311_v43 = vrot.slane (!%p212_p2), %v272_v40, %v310_v33  ;;  %v315_v44 = vrot.slane (!%p212_p2), %v272_v40, %v314_v36  ;;  %v319_v48 = vrot.slane (!%p212_p2), %v272_v40, %v318_v42 }
   0xd   : > { %v263_v14 = vsub.f32 %v261_v12, %v262_v13  ;;  %s520_s22 = smov (!%p240_p3, %s394_s22), 1  ;;  %v284_v28 = vsub.s32 %v281_v26, %v283_v27  ;;  %v323_v45 = vunpack.c.0.s8 %v322_v38 }
   0xe   : > { %s402_s11 = smul.u32 3, %s520_s22  ;;  %v320_v49 = vcombine.low %v311_v43, %v315_v44 }
   0xf   : > { %v264_v15 = vmax.f32 %v263_v14, 0.0  ;;  %v326_v50 = vsub.s32 %v323_v45, %v283_v27  ;;  %s403_s17 = smul.u32 6, %s520_s22 }
  0x10   : > { %s243_s14 = scalar_lea.vmem %s512_s0, %s402_s11 }
  0x11   : > { %v266_v16 = vadd.f32 1e-05, %v264_v15  ;;  %v273_v29 = vld [vmem:[%s243_s14] sm:$0x7]  ;;  %v327_v51 = vrot.slane %v320_v49, %v326_v50  ;;  %v334_v52 = vrot.slane %v319_v48, %v326_v50  ;;  %s248_s20 = scalar_lea.vmem %s518_s6, %s403_s17 }
  0x12   : > { %v274_v31 = vunpack.c.l.bf16 %v273_v29 }
  0x13   : > { %416 = vrsqrt.f32 %v266_v16  ;;  %v335_v53 = vcombine.low %v327_v51, %v334_v52 }
  0x1d   : > { %v417_v18 = vpop.eup %416 }
  0x1e   : > { %v268_v19 = vmul.f32 %v417_v18, %v265_v17 }
  0x20   : > { %277 = vperm.xlu0 %415, %v268_v19   ;;  %v270_v21 = vmul.f32 %v268_v19, %v260_v11 }
  0x22   : > { %v271_v22 = vsub.f32 %v269_v20, %v270_v21 }
  0x24   : > { %290 = vperm.xlu0 %415, %v271_v22  }
  0x9f   : > { %v278_v30 = vpop.permute.xlu0 %277 }
  0xa0   : > { %v285_v32 = vrot.slane %v278_v30, %v284_v28 }
  0xa2   : > { %v287_v35 = vmul.f32 %v285_v32, %v274_v31 }
  0xa3   : > { %v291_v34 = vpop.permute.xlu0 %290 }
  0xa4   : > { %v298_v39 = vrot.slane %v291_v34, %v284_v28 }
  0xa6   : > { %v300_v41 = vadd.f32 %v298_v39, %v287_v35 }
  0xa8   : > { %v303_v46 = vmin.f32 %v300_v41, 0.0  ;;  %v302_v54 = vadd.f32 1.0, %v300_v41  ;;  %vm301_vm1 = vcmp.gt.f32.partialorder %v300_v41, 0.0 }
  0xaa   : > { %v304_v47 = vmul.f32 1.442695, %v303_v46 }
  0xac   : > { %418 = vpow2.f32 %v304_v47 }
  0xb6   : > { %v419_v55 = vpop.eup %418 }
  0xb7   : > { %v306_v56 = vsel %vm301_vm1, %v302_v54, %v419_v55 }
  0xb8   : > { %v337_v57 = vmul.f32 %v335_v53, %v306_v56 }
  0xba   : > { %338 = vst [vmem:[%s248_s20] sm:$0x3f] %v337_v57 }
  0xbb PF: > { %s16_s21 = sadd.s32 1, %s426_s21  }
  0xbc   : > { %p13_p4 = scmp.ge.s32.totalorder %s16_s21, 4  }
  0xbe   :  { %15 = sbr.rel (!%p13_p4) target bundleno = 1 (0x1), region = 74 }

// kernel: attention_map_forward.4
= control target key start
LH: loop header
LB: loop body
LE: loop exit
PB: predicated region body
PF: predicated region fallthrough
CT: control target
= control target key end

     0   :  { %s804_s30 = smov 0   ;;  %s872_s0 = inlined_call_operand.vmem [shape: bf16[2,4,384], index: 0, kind: input, shape index: {}]   ;;  %s873_s1 = inlined_call_operand.vmem [shape: f32[2,4,1], index: 1, kind: input, shape index: {}]   ;;  %s874_s2 = inlined_call_operand.vmem [shape: f32[2,4,1], index: 2, kind: input, shape index: {}]   ;;  %s875_s3 = inlined_call_operand.vmem [shape: f32[4,1], index: 3, kind: input, shape index: {}]   ;;  %s876_s4 = inlined_call_operand.vmem [shape: f32[4,1], index: 4, kind: input, shape index: {}]   ;;  %s877_s5 = inlined_call_operand.vmem [shape: bf16[2,4], index: 5, kind: input, shape index: {}]   ;;  %s878_s6 = inlined_call_operand.vmem [shape: f32[1,384], index: 6, kind: input, shape index: {}]   ;;  %s879_s7 = inlined_call_operand.vmem [shape: bf16[2,2,384], index: 7, kind: output, shape index: {0}]   ;;  %s880_s8 = inlined_call_operand.vmem [shape: f32[2,2,1], index: 8, kind: output, shape index: {1}]   ;;  %s881_s9 = inlined_call_operand.vmem [shape: f32[2,2,1], index: 9, kind: output, shape index: {2}]  }
   0x1 LB: > { %s700_s10 = sadd.s32 4294967295, %s747_s30   ;;  %p704_p0 = scmp.ge.s32.totalorder %s747_s30, 1  ;;  %s747_s30 = sphi %s804_s30, %s20_s30  }
   0x2   : > { %p292_p1 = scmp.lt.s32.totalorder %s747_s30, 3 }
   0x4   : > { %p293_p2 = pnand %p704_p0, %p292_p1 }
   0x5   : > { %v353_v0 = vld [vmem:[%s873_s1] sm:$0xf] (!%p293_p2)  ;;  %vm355_vm0 = vcmask (!%p293_p2), 3072   ;;  %v749_v1 = vmov (!%p293_p2), 0   ;;  %v354_v2 = vld [vmem:[%s873_s1 + $0x4] sm:$0xf] (!%p293_p2)  ;;  %v387_v26 = vlaneseq (!%p293_p2) }
   0x6   : > { %296 = sbr.rel (%p293_p2) target bundleno = 544 (0x220), region = 48  ;;  %738 = vset.pattern.permute.xlu0 (!%p293_p2), %v749_v1  ;;  %v356_v3 = vsel (!%p293_p2), %vm355_vm0, %v353_v0, 0.0  ;;  %v359_v4 = vld [vmem:[%s874_s2] sm:$0xf] (!%p293_p2)  ;;  %463 = vmatprep.mubr.bf16.mxu0 (!%p293_p2), %v749_v1  ;;  %v357_v5 = vsel (!%p293_p2), %vm355_vm0, %v354_v2, 0.0  ;;  %v750_v23 = vmov (!%p293_p2), 0.0  }
   0x7   : > { %v360_v6 = vld [vmem:[%s874_s2 + $0x4] sm:$0xf] (!%p293_p2)  ;;  %v361_v7 = vsel (!%p293_p2), %vm355_vm0, %v359_v4, 0.0  ;;  %v358_v8 = vadd.f32 (!%p293_p2), %v357_v5, %v356_v3  ;;  %v369_v17 = vld [vmem:[%s875_s3] sm:$0xf] (!%p293_p2)  ;;  %717 = vmatprep.subr.bf16.mxu1 (!%p293_p2), %v750_v23  ;;  %vm751_vm1 = vmmov (!%p293_p2), 0  }
   0x8   : > { %v362_v9 = vsel (!%p293_p2), %vm355_vm0, %v360_v6, 0.0  ;;  %v373_v20 = vld [vmem:[%s876_s4] sm:$0xf] (!%p293_p2)  ;;  %719 = vmatprep.mubr.msk.bf16.mxu1 (!%p293_p2), %vm751_vm1, %v750_v23  ;;  %p335_p3 = scmp.lt.s32.totalorder (!%p293_p2), %s700_s10, 1  ;;  %v752_v24 = vmov (!%p293_p2), 839922192  }
   0x9   : > { %v363_v10 = vadd.f32 (!%p293_p2), %v362_v9, %v361_v7  ;;  %v364_v11 = vmul.f32 (!%p293_p2), 0.001953125, %v358_v8  ;;  %v385_v25 = vunpack.c.l.s4 (!%p293_p2), %v752_v24  ;;  %v388_v28 = vshrl.u32 (!%p293_p2), %v387_v26, 7  ;;  %v410_v48 = vld [vmem:[%s877_s5] sm:$0x1] (!%p293_p2) }
   0xa   : > { %vm421_vm2 = vcmask (!%p293_p2), 1041408   ;;  %vm417_vm3 = vcmask (!%p293_p2), 31744   ;;  %v376_v50 = vld [vmem:[%s878_s6] sm:$0x7] (!%p293_p2)  ;;  %v753_v52 = vmov (!%p293_p2), 1966171168  }
   0xb   : > { %v365_v12 = vmul.f32 (!%p293_p2), 0.001953125, %v363_v10  ;;  %v366_v13 = vmul.f32 (!%p293_p2), %v364_v11, %v364_v11  ;;  %v386_v27 = vunpack.c.0.s8 (!%p293_p2), %v385_v25  ;;  %vm543_vm4 = vcmp.gt.f32.partialorder (!%p293_p2), %v376_v50, 0.0 }
   0xc   : > { %v555_v51 = vsub.s32 (!%p293_p2), 2, %v388_v28  ;;  %v520_v53 = vunpack.c.l.s4 (!%p293_p2), %v753_v52  ;;  %v547_v54 = vsub.s32 (!%p293_p2), 0, %v388_v28  ;;  %v544_v55 = vsel (!%p293_p2), %vm543_vm4, 1, %v749_v1 }
   0xd   : > { %v367_v14 = vsub.f32 %v365_v12, %v366_v13  ;;  %s883_s10 = smov (!%p335_p3, %s700_s10), 1  ;;  %v389_v29 = vsub.s32 %v386_v27, %v388_v28  ;;  %v551_v56 = vsub.s32 1, %v388_v28  ;;  %vm582_vm8 = vcmask 1024  }
   0xe   : > { %s723_s23 = smul.u32 6, %s883_s10  ;;  %v556_v57 = vrot.slane %v544_v55, %v555_v51  ;;  %v521_v58 = vunpack.c.0.s8 %v520_v53  ;;  %v548_v59 = vrot.slane %v544_v55, %v547_v54  ;;  %s706_s16 = sshll.u32 %s883_s10, 1 }
   0xf   : > { %v368_v15 = vmax.f32 %v367_v14, 0.0  ;;  %v552_v60 = vrot.slane %v544_v55, %v551_v56  ;;  %s724_s12 = smul.u32 3, %s883_s10  ;;  %s347_s19 = scalar_lea.vmem %s880_s8, %s706_s16 }
  0x10   : > { %s339_s26 = scalar_lea.vmem %s872_s0, %s723_s23  ;;  %vm559_vm5 = vcmp.eq.s32.totalorder %v556_v57, 1  ;;  %v524_v61 = vsub.s32 %v521_v58, %v388_v28  ;;  %vm557_vm6 = vcmp.eq.s32.totalorder %v548_v59, 1  ;;  %s351_s22 = scalar_lea.vmem %s881_s9, %s706_s16 }
  0x11   : > { %v370_v16 = vadd.f32 1e-05, %v368_v15  ;;  %v377_v30 = vld [vmem:[%s339_s26] sm:$0x3f]  ;;  %vm558_vm7 = vcmp.eq.s32.totalorder %v552_v60, 1  ;;  %s343_s15 = scalar_lea.vmem %s879_s7, %s724_s12 }
  0x12   : > { %v378_v32 = vunpack.c.l.bf16 %v377_v30  ;;  %v379_v33 = vunpack.c.h.bf16 %v377_v30 }
  0x13   : > { %739 = vrsqrt.f32 %v370_v16 }
  0x1d   : > { %v740_v18 = vpop.eup %739 }
  0x1e   : > { %v372_v19 = vmul.f32 %v740_v18, %v369_v17 }
  0x20   : > { %382 = vperm.xlu0 %738, %v372_v19   ;;  %v374_v21 = vmul.f32 %v372_v19, %v364_v11 }
  0x22   : > { %v375_v22 = vsub.f32 %v373_v20, %v374_v21 }
  0x24   : > { %396 = vperm.xlu0 %738, %v375_v22  }
  0x9f   : > { %v383_v31 = vpop.permute.xlu0 %382 }
  0xa0   : > { %v390_v34 = vrot.slane %v383_v31, %v389_v29 }
  0xa2   : > { %v392_v36 = vmul.f32 %v390_v34, %v378_v32  ;;  %v393_v37 = vmul.f32 %v390_v34, %v379_v33 }
  0xa3   : > { %v397_v35 = vpop.permute.xlu0 %396 }
  0xa4   : > { %v404_v38 = vrot.slane %v397_v35, %v389_v29 }
  0xa6   : > { %v406_v39 = vadd.f32 %v404_v38, %v392_v36  ;;  %v407_v40 = vadd.f32 %v404_v38, %v393_v37 }
  0xa8   : > { %v408_v41 = vmax.f32 %v406_v39, 0.0  ;;  %v409_v42 = vmax.f32 %v407_v40, 0.0 }
  0xaa   : > { %v416_v43 = vpack.c.bf16 %v409_v42, %v409_v42  ;;  %v412_v44 = vcombine.high %v408_v41, %v408_v41  ;;  %v414_v45 = vpack.c.bf16 %v408_v41, %v408_v41 }
  0xac   : > { %v429_v46 = vsel %vm421_vm2, %v416_v43, 0  ;;  %v415_v47 = vpack.c.bf16 %v412_v44, %v412_v44  ;;  %v423_v49 = vsel %vm421_vm2, %v414_v45, 0 }
  0xad   : > { %718 = vmatpush3.bf16.msra.mxu1 %v429_v46 }
  0xae   : > { %708 = vmatprep.subr.msk.bf16.mxu0 %vm421_vm2, %v415_v47 }
  0xaf   : > { %432 = vmatpush1.bf16.msra.mxu0 %v423_v49 }
  0xb0   : > { %720 = vmatmul.mubr.msk.bf16.vlgmr.msra.gmra.mrb[0].mxu1 %vm417_vm3, %v410_v48 }
  0xb2   : > { %709 = vmatmul.mubr.msk.bf16.vlgmr.msra.gmra.mrb[0].mxu0 %vm417_vm3, %v410_v48 }
 0x183   : > { %v506_v62 = vpop.f32.mrb[0].mxu1 }
 0x184   : > { %v514_v63 = vpack.c.bf16 %v506_v62, %v506_v62  ;;  %v562_v0 = vsel %vm559_vm5, %v506_v62, 0.0  ;;  %v721_v2 = vpop.f32.mrb[1].mxu1 }
 0x185   : > { %v465_v3 = vpop.f32.mrb[0].mxu0  ;;  %v509_v4 = vpop.f32.mrb[2].mxu1  ;;  %v573_v7 = vmul.f32 %v562_v0, %v562_v0  ;;  %v566_v17 = vsel %vm421_vm2, %v562_v0, 0.0 }
 0x186   : > { %v560_v5 = vsel %vm557_vm6, %v465_v3, 0.0  ;;  %v532_v6 = vrot.slane %v514_v63, %v524_v61  ;;  %v467_v1 = vpop.f32.mrb[1].mxu0  ;;  %v722_v8 = vpop.f32.mrb[3].mxu1 }
 0x187   : > { %v563_v9 = vsel %vm421_vm2, %v560_v5, 0.0  ;;  %v571_v10 = vmul.f32 %v560_v5, %v560_v5  ;;  %v711_v11 = vpack.c.bf16 %v467_v1, %v465_v3  ;;  %v561_v12 = vsel %vm558_vm7, %v467_v1, 0.0  ;;  %v469_v13 = vpop.f32.mrb[2].mxu0 }
 0x188   : > { %v564_v14 = vsel %vm421_vm2, %v561_v12, 0.0  ;;  %v572_v15 = vmul.f32 %v561_v12, %v561_v12  ;;  %v470_v16 = vpop.f32.mrb[3].mxu0  ;;  %v577_v22 = vsel %vm421_vm2, %v573_v7, 0.0 }
 0x189   : > { %v525_v18 = vrot.slane %v711_v11, %v524_v61  ;;  %v565_v19 = vadd.f32 %v564_v14, %v563_v9  ;;  %v574_v20 = vsel %vm421_vm2, %v571_v10, 0.0 }
 0x18a   : > { %v575_v21 = vsel %vm421_vm2, %v572_v15, 0.0 }
 0x18b   : > { %v533_v23 = vcombine.low %v525_v18, %v532_v6  ;;  %v567_v24 = vadd.f32 %v566_v17, %v565_v19  ;;  %v576_v25 = vadd.f32 %v575_v21, %v574_v20 }
 0x18d   : > { %712 = vst.sshfl [vmem:[%s343_s15] sm:$0x15 pattern:$0x73625140] %v533_v23  ;;  %568 = vadd.xlane.f32.xlu1 %v567_v24  ;;  %v578_v26 = vadd.f32 %v577_v22, %v576_v25 }
 0x191   : > { %579 = vadd.xlane.f32.xlu1 %v578_v26 }
 0x21a   : > { %v569_v27 = vpop.xlane.xlu1 %568 }
 0x21b   : > { %583 = vst.msk [vmem:[%s347_s19] sm:$0x3] %vm582_vm8, %v569_v27 }
 0x21e   : > { %v580_v28 = vpop.xlane.xlu1 %579 }
 0x21f   : > { %584 = vst.msk [vmem:[%s351_s22] sm:$0x3] %vm582_vm8, %v580_v28 }
 0x220 PF: > { %s20_s30 = sadd.s32 1, %s747_s30  }
 0x221   : > { %p17_p4 = scmp.ge.s32.totalorder %s20_s30, 4  }
 0x223   :  { %19 = sbr.rel (!%p17_p4) target bundleno = 1 (0x1), region = 102 }

// kernel: attention_map_forward.3
= control target key start
LH: loop header
LB: loop body
LE: loop exit
PB: predicated region body
PF: predicated region fallthrough
CT: control target
= control target key end

     0   :  { %s881_s21 = smov 0   ;;  %s973_s0 = inlined_call_operand.vmem [shape: bf16[2,4,384], index: 0, kind: input, shape index: {}]   ;;  %s974_s1 = inlined_call_operand.vmem [shape: bf16[4,36], index: 1, kind: input, shape index: {}]   ;;  %s975_s2 = inlined_call_operand.vmem [shape: f32[4,1], index: 2, kind: input, shape index: {}]   ;;  %s976_s3 = inlined_call_operand.vmem [shape: f32[1,384], index: 3, kind: input, shape index: {}]   ;;  %s977_s4 = inlined_call_operand.vmem [shape: bf16[2,4,384], index: 4, kind: output, shape index: {0}]   ;;  %s978_s5 = inlined_call_operand.vmem [shape: f32[2,4,1], index: 5, kind: output, shape index: {1}]   ;;  %s979_s6 = inlined_call_operand.vmem [shape: f32[2,4,1], index: 6, kind: output, shape index: {2}]  }
   0x1 LB: > { %s754_s22 = sadd.s32 4294967295, %s832_s21   ;;  %p758_p0 = scmp.ge.s32.totalorder %s832_s21, 1  ;;  %s832_s21 = sphi %s881_s21, %s17_s21  }
   0x2   : > { %p217_p1 = scmp.lt.s32.totalorder %s832_s21, 3 }
   0x4   : > { %p218_p2 = pnand %p758_p0, %p217_p1 }
   0x5   : > { %p255_p3 = scmp.lt.s32.totalorder (!%p218_p2), %s754_s22, 1  ;;  %v280_v0 = vlaneseq (!%p218_p2)  ;;  %v834_v1 = vmov (!%p218_p2), 1983009808   ;;  %v835_v4 = vmov (!%p218_p2), 0   ;;  %s836_s27 = smov (!%p218_p2), 126   ;;  %vm294_vm0 = vcmask (!%p218_p2), 238592  }
   0x6   : > { %221 = sbr.rel (%p218_p2) target bundleno = 547 (0x223), region = 36  ;;  %v278_v2 = vunpack.c.l.s4 (!%p218_p2), %v834_v1  ;;  %520 = vmatprep.mubr.bf16.mxu0 (!%p218_p2), %v835_v4  ;;  %814 = vset.pattern.permute.xlu0 (!%p218_p2), %v835_v4  ;;  %s837_s28 = smov (!%p218_p2), 127   ;;  %v842_v13 = vmov (!%p218_p2), 0.0   ;;  %vm845_vm1 = vmmov (!%p218_p2), 0   ;;  %v428_v14 = vld [vmem:[%s975_s2] sm:$0xf] (!%p218_p2) }
   0x7   : > { %v891_v3 = vshrl.u32 (!%p218_p2), %v280_v0, 7  ;;  %s838_s29 = smov (!%p218_p2), 110   ;;  %s839_s30 = smov (!%p218_p2), 109   ;;  %783 = vmatprep.subr.bf16.mxu1 (!%p218_p2), %v842_v13  ;;  %789 = vmatprep.mubr.msk.bf16.mxu1 (!%p218_p2), %vm845_vm1, %v842_v13  ;;  %vm317_vm2 = vcmask (!%p218_p2), 240642   ;;  %vm410_vm3 = vcmask (!%p218_p2), 1043696   ;;  %vm310_vm4 = vcmask (!%p218_p2), 1043456  }
   0x8   : > { %v279_v5 = vunpack.c.0.s8 (!%p218_p2), %v278_v2  ;;  %s840_s7 = smov (!%p218_p2), 108   ;;  %s841_s8 = smov (!%p218_p2), 92   ;;  %vm312_vm5 = vcmask (!%p218_p2), 1039360   ;;  %vm326_vm6 = vcmask (!%p218_p2), 1031168   ;;  %vm339_vm7 = vcmask (!%p218_p2), 900096  }
   0x9   : > { %s843_s9 = smov (!%p218_p2), 91   ;;  %s844_s10 = smov (!%p218_p2), 90   ;;  %vm352_vm8 = vcmask (!%p218_p2), 891904   ;;  %vm365_vm9 = vcmask (!%p218_p2), 883712   ;;  %vm378_vm10 = vcmask (!%p218_p2), 752640   ;;  %vm391_vm11 = vcmask (!%p218_p2), 744448  }
   0xa   : > { %v897_v6 = vsub.s32 (!%p218_p2), %v279_v5, %v891_v3  ;;  %vm415_vm12 = vcmask (!%p218_p2), 1041648   ;;  %vm404_vm13 = vcmask (!%p218_p2), 736256   ;;  %vm478_vm14 = vcmask (!%p218_p2), 1041408  }
   0xb   : > { %vm474_vm15 = vcmask (!%p218_p2), 293888  }
   0xd   : > { %s981_s22 = smov (!%p255_p3, %s754_s22), 1 }
   0xe   : > { %s793_s23 = smul.u32 6, %s981_s22  ;;  %s761_s20 = sshll.u32 %s981_s22, 2 }
  0x10   : > { %s259_s26 = scalar_lea.vmem %s973_s0, %s793_s23  ;;  %s264_s19 = scalar_lea.vmem %s977_s4, %s793_s23 }
  0x11   : > { %v274_v7 = vld [vmem:[%s259_s26] sm:$0x3f]  ;;  %s268_s26 = scalar_lea.vmem %s978_s5, %s761_s20 }
  0x12   : > { %v283_v8 = vrot.slane %v274_v7, %v897_v6  ;;  %763 = vst.sshfl [vmem:[#allocation2] sm:$0xf pattern:$0x76325410] %v274_v7  ;;  %v276_v9 = vcombine.high %v274_v7, %v274_v7  ;;  %v296_v10 = vcombine.low %v274_v7, %v274_v7 }
  0x14   : > { %319 = vrot.lane.b32.xlu1 %v283_v8, %s836_s27  ;;  %306 = vrot.lane.b32.xlu0 %v283_v8, %s837_s28  ;;  %v290_v11 = vrot.slane %v276_v9, %v897_v6  ;;  %v303_v12 = vrot.slane %v296_v10, %v897_v6 }
  0x16   : > { %295 = vst.msk [vmem:[#allocation2 + $0x8] sm:$0x3] %vm294_vm0, %v290_v11 }
  0x18   : > { %334 = vrot.lane.b32.xlu1 %v283_v8, %s838_s29  ;;  %345 = vrot.lane.b32.xlu0 %v283_v8, %s839_s30 }
  0x1c   : > { %304 = vrot.lane.b32.xlu0 %v303_v12, %s837_s28  ;;  %321 = vrot.lane.b32.xlu1 %v290_v11, %s836_s27  ;;  %s272_s28 = scalar_lea.vmem %s979_s6, %s761_s20 }
  0x20   : > { %332 = vrot.lane.b32.xlu0 %v303_v12, %s838_s29  ;;  %347 = vrot.lane.b32.xlu1 %v290_v11, %s839_s30 }
  0x24   : > { %358 = vrot.lane.b32.xlu0 %v303_v12, %s840_s7  ;;  %360 = vrot.lane.b32.xlu1 %v283_v8, %s840_s7 }
  0x28   : > { %371 = vrot.lane.b32.xlu0 %v283_v8, %s841_s8  ;;  %373 = vrot.lane.b32.xlu1 %v290_v11, %s841_s8 }
  0x2c   : > { %384 = vrot.lane.b32.xlu0 %v303_v12, %s843_s9  ;;  %386 = vrot.lane.b32.xlu1 %v283_v8, %s843_s9 }
  0x30   : > { %397 = vrot.lane.b32.xlu0 %v283_v8, %s844_s10  ;;  %399 = vrot.lane.b32.xlu1 %v290_v11, %s844_s10  ;;  %v417_v11 = vld [vmem:[%s974_s1] sm:$0x3] }
  0x34   : > { %431 = vperm.xlu0 %814, %v428_v14  }
  0x86   : > { %v320_v15 = vpop.permute.xlu1 %319  ;;  %v307_v16 = vpop.permute.xlu0 %306 }
  0x87   : > { %318 = vst.msk [vmem:[#allocation2 + $0x8] sm:$0xc] %vm317_vm2, %v307_v16  ;;  %v323_v21 = vrot.slane %v320_v15, 4  ;;  %v309_v22 = vrot.slane %v307_v16, 4  ;;  %v606_v16 = vsub.s32 2, %v891_v3 }
  0x88   : > { %411 = vst.msk [vmem:[#allocation2 + $0x8] sm:$0xf] %vm410_vm3, %v835_v4 }
  0x8a   : > { %v335_v17 = vpop.permute.xlu1 %334  ;;  %v346_v18 = vpop.permute.xlu0 %345 }
  0x8b   : > { %344 = vst.msk [vmem:[#allocation2 + $0x14] sm:$0xc] %vm317_vm2, %v335_v17  ;;  %v337_v31 = vrot.slane %v335_v17, 4  ;;  %v349_v32 = vrot.slane %v346_v18, 4 }
  0x8e   : > { %v305_v19 = vpop.permute.xlu0 %304  ;;  %v322_v20 = vpop.permute.xlu1 %321 }
  0x8f   : > { %v308_v23 = vrot.slane %v305_v19, 4  ;;  %v324_v24 = vrot.slane %v322_v20, 4  ;;  %331 = vst.msk [vmem:[#allocation2 + $0x14] sm:$0x3] %vm294_vm0, %v322_v20 }
  0x90   : > { %412 = vst.msk [vmem:[#allocation2 + $0x14] sm:$0xf] %vm410_vm3, %v835_v4 }
  0x91   : > { %v311_v25 = vsel %vm310_vm4, %v308_v23, %v309_v22  ;;  %v325_v26 = vsel %vm310_vm4, %v323_v21, %v324_v24 }
  0x92   : > { %v313_v27 = vsel %vm312_vm5, %v305_v19, %v311_v25  ;;  %v327_v28 = vsel %vm326_vm6, %v320_v15, %v325_v26  ;;  %v333_v29 = vpop.permute.xlu0 %332  ;;  %v348_v30 = vpop.permute.xlu1 %347  ;;  %v602_v19 = vsub.s32 1, %v891_v3  ;;  %vm634_vm5 = vcmask 3072  }
  0x93   : > { %316 = vst [vmem:[#allocation2] sm:$0xcc] %v313_v27  ;;  %330 = vst [vmem:[#allocation2 + $0xc] sm:$0x33] %v327_v28  ;;  %v336_v33 = vrot.slane %v333_v29, 4  ;;  %v350_v34 = vrot.slane %v348_v30, 4 }
  0x94   : > { %357 = vst.msk [vmem:[#allocation2 + $0x20] sm:$0x3] %vm294_vm0, %v348_v30 }
  0x95   : > { %v338_v35 = vsel %vm310_vm4, %v336_v33, %v337_v31  ;;  %v351_v36 = vsel %vm310_vm4, %v349_v32, %v350_v34 }
  0x96   : > { %v340_v37 = vsel %vm339_vm7, %v333_v29, %v338_v35  ;;  %v353_v38 = vsel %vm352_vm8, %v346_v18, %v351_v36  ;;  %v359_v39 = vpop.permute.xlu0 %358  ;;  %v361_v40 = vpop.permute.xlu1 %360  ;;  %v598_v18 = vsub.s32 0, %v891_v3 }
  0x97   : > { %343 = vst [vmem:[#allocation2 + $0xc] sm:$0xcc] %v340_v37  ;;  %356 = vst [vmem:[#allocation2 + $0x18] sm:$0x33] %v353_v38  ;;  %v362_v41 = vrot.slane %v359_v39, 4  ;;  %v363_v42 = vrot.slane %v361_v40, 4 }
  0x98   : > { %370 = vst.msk [vmem:[#allocation2 + $0x20] sm:$0xc] %vm317_vm2, %v361_v40  ;;  %v818_v43 = vld [vmem:[#allocation2 + $0x8] ss:$12 sps:$4 sm:$0xff]  }
  0x99   : > { %413 = vst.msk [vmem:[#allocation2 + $0x20] sm:$0xf] %vm410_vm3, %v835_v4  ;;  %v364_v44 = vsel %vm310_vm4, %v362_v41, %v363_v42  ;;  %784 = vmatpush3.bf16.msra.mxu1 %v818_v43 }
  0x9a   : > { %v366_v45 = vsel %vm365_vm9, %v359_v39, %v364_v44  ;;  %v372_v46 = vpop.permute.xlu0 %371  ;;  %v374_v47 = vpop.permute.xlu1 %373  ;;  %785 = vmatprep.subr.bf16.mxu1 %v842_v13 }
  0x9b   : > { %369 = vst [vmem:[#allocation2 + $0x18] sm:$0xcc] %v366_v45  ;;  %v375_v48 = vrot.slane %v372_v46, 4  ;;  %v376_v49 = vrot.slane %v374_v47, 4  ;;  %383 = vst.msk [vmem:[#allocation2 + $0x2c] sm:$0x3] %vm294_vm0, %v374_v47 }
  0x9d   : > { %v377_v50 = vsel %vm310_vm4, %v375_v48, %v376_v49 }
  0x9e   : > { %v379_v51 = vsel %vm378_vm10, %v372_v46, %v377_v50  ;;  %v385_v52 = vpop.permute.xlu0 %384  ;;  %v387_v53 = vpop.permute.xlu1 %386  ;;  %v815_v54 = vld [vmem:[#allocation2 + $0x4] ss:$12 sps:$4 sm:$0xff]   ;;  %v817_v55 = vld [vmem:[#allocation2] ss:$12 sps:$4 sm:$0xff]  }
  0x9f   : > { %382 = vst [vmem:[#allocation2 + $0x24] sm:$0x33] %v379_v51  ;;  %v388_v56 = vrot.slane %v385_v52, 4  ;;  %v389_v57 = vrot.slane %v387_v53, 4  ;;  %396 = vst.msk [vmem:[#allocation2 + $0x2c] sm:$0xc] %vm317_vm2, %v387_v53  ;;  %488 = vmatprep.subr.bf16.mxu0 %v815_v54 }
  0xa0   : > { %414 = vst.msk [vmem:[#allocation2 + $0x2c] sm:$0xf] %vm410_vm3, %v835_v4  ;;  %489 = vmatpush1.bf16.msra.mxu0 %v817_v55 }
  0xa1   : > { %v390_v58 = vsel %vm310_vm4, %v388_v56, %v389_v57 }
  0xa2   : > { %v392_v59 = vsel %vm391_vm11, %v385_v52, %v390_v58  ;;  %v398_v60 = vpop.permute.xlu0 %397  ;;  %v400_v61 = vpop.permute.xlu1 %399 }
  0xa3   : > { %395 = vst [vmem:[#allocation2 + $0x24] sm:$0xcc] %v392_v59  ;;  %v401_v62 = vrot.slane %v398_v60, 4  ;;  %v402_v63 = vrot.slane %v400_v61, 4  ;;  %409 = vst.msk [vmem:[#allocation2 + $0x38] sm:$0x3] %vm294_vm0, %v400_v61 }
  0xa4   : > { %416 = vst.msk [vmem:[#allocation2 + $0x38] sm:$0x3] %vm415_vm12, %v835_v4 }
  0xa5   : > { %v403_v0 = vsel %vm310_vm4, %v401_v62, %v402_v63 }
  0xa6   : > { %v405_v1 = vsel %vm404_vm13, %v398_v60, %v403_v0 }
  0xa7   : > { %408 = vst [vmem:[#allocation2 + $0x30] sm:$0x33] %v405_v1  ;;  %v822_v2 = vld [vmem:[#allocation2 + $0x20] ss:$12 sps:$4 sm:$0xff]  }
  0xa8   : > { %786 = vmatpush3.bf16.msra.mxu1 %v822_v2 }
  0xa9   : > { %787 = vmatprep.subr.bf16.mxu1 %v842_v13  ;;  %v569_v13 = vld [vmem:[%s976_s3] sm:$0x7] }
  0xaa   : > { %v819_v5 = vld [vmem:[#allocation2 + $0x1c] ss:$12 sps:$4 sm:$0xff]   ;;  %v821_v7 = vld [vmem:[#allocation2 + $0x18] ss:$12 sps:$4 sm:$0xff]   ;;  %vm594_vm0 = vcmp.gt.f32.partialorder %v569_v13, 0.0 }
  0xab   : > { %v825_v8 = vld [vmem:[#allocation2 + $0x38] ss:$0 sps:$4 sm:$0x33]   ;;  %490 = vmatprep.subr.bf16.mxu0 %v819_v5  ;;  %v595_v17 = vsel %vm594_vm0, 1, %v835_v4 }
  0xac   : > { %491 = vmatpush1.bf16.msra.mxu0 %v821_v7  ;;  %v486_v9 = vsel %vm478_vm14, %v825_v8, 0  ;;  %v607_v21 = vrot.slane %v595_v17, %v606_v16  ;;  %v599_v22 = vrot.slane %v595_v17, %v598_v18  ;;  %v603_v25 = vrot.slane %v595_v17, %v602_v19 }
  0xad   : > { %788 = vmatpush3.bf16.msra.mxu1 %v486_v9 }
  0xae   : > { %v426_v10 = vld [vmem:[#allocation2 + $0x30] sm:$0x33]  ;;  %vm610_vm1 = vcmp.eq.s32.totalorder %v607_v21, 1  ;;  %vm608_vm2 = vcmp.eq.s32.totalorder %v599_v22, 1  ;;  %vm609_vm3 = vcmp.eq.s32.totalorder %v603_v25, 1 }
  0xaf   : > { %v771_v12 = vcombine.high %v426_v10, %v426_v10  ;;  %v770_v14 = vcombine.low %v426_v10, %v426_v10 }
  0xb0   : > { %790 = vmatmul.mubr.msk.bf16.vlgmr.msra.gmra.mrb[0].mxu1 %vm474_vm15, %v417_v11 }
  0xb1   : > { %773 = vmatprep.subr.msk.bf16.mxu0 %vm478_vm14, %v771_v12  ;;  %v480_v15 = vsel %vm478_vm14, %v770_v14, 0 }
  0xb2   : > { %493 = vmatpush1.bf16.msra.mxu0 %v480_v15 }
  0xb3   : > { %v432_v20 = vpop.permute.xlu0 %431 }
  0xb5   : > { %774 = vmatmul.mubr.msk.bf16.vlgmr.msra.gmra.mrb[0].mxu0 %vm474_vm15, %v417_v11 }
 0x183   : > { %v563_v23 = vpop.f32.mrb[0].mxu1 }
 0x184   : > { %v564_v24 = vadd.f32 %v563_v23, %v432_v20  ;;  %v791_v26 = vpop.f32.mrb[1].mxu1 }
 0x185   : > { %v566_v27 = vpop.f32.mrb[2].mxu1 }
 0x186   : > { %v572_v28 = vpack.c.bf16 %v564_v24, %v564_v24  ;;  %v792_v29 = vpop.f32.mrb[3].mxu1  ;;  %v613_v4 = vsel %vm610_vm1, %v564_v24, 0.0 }
 0x187   : > { %v625_v41 = vmul.f32 %v613_v4, %v613_v4  ;;  %v618_v47 = vsel %vm310_vm4, %v613_v4, 0.0 }
 0x188   : > { %v522_v30 = vpop.f32.mrb[0].mxu0  ;;  %v590_v35 = vrot.slane %v572_v28, %v897_v6 }
 0x189   : > { %v523_v31 = vadd.f32 %v522_v30, %v432_v20  ;;  %v524_v32 = vpop.f32.mrb[1].mxu0  ;;  %v629_v52 = vsel %vm310_vm4, %v625_v41, 0.0 }
 0x18a   : > { %v525_v33 = vadd.f32 %v524_v32, %v432_v20  ;;  %v526_v3 = vpop.f32.mrb[2].mxu0 }
 0x18b   : > { %v611_v34 = vsel %vm608_vm2, %v523_v31, 0.0  ;;  %v527_v36 = vpop.f32.mrb[3].mxu0 }
 0x18c   : > { %v615_v37 = vsel %vm310_vm4, %v611_v34, 0.0  ;;  %v623_v38 = vmul.f32 %v611_v34, %v611_v34  ;;  %v776_v39 = vpack.c.bf16 %v525_v33, %v523_v31  ;;  %v612_v40 = vsel %vm609_vm3, %v525_v33, 0.0 }
 0x18d   : > { %v616_v42 = vsel %vm310_vm4, %v612_v40, 0.0  ;;  %v624_v43 = vmul.f32 %v612_v40, %v612_v40 }
 0x18e   : > { %v583_v44 = vrot.slane %v776_v39, %v897_v6  ;;  %v617_v45 = vadd.f32 %v616_v42, %v615_v37  ;;  %v626_v46 = vsel %vm310_vm4, %v623_v38, 0.0 }
 0x18f   : > { %v627_v48 = vsel %vm310_vm4, %v624_v43, 0.0 }
 0x190   : > { %v591_v49 = vcombine.low %v583_v44, %v590_v35  ;;  %v619_v50 = vadd.f32 %v618_v47, %v617_v45  ;;  %v628_v51 = vadd.f32 %v627_v48, %v626_v46 }
 0x192   : > { %593 = vst [vmem:[%s264_s19] sm:$0x3f] %v591_v49  ;;  %620 = vadd.xlane.f32.xlu1 %v619_v50  ;;  %v630_v6 = vadd.f32 %v629_v52, %v628_v51 }
 0x194   : > { %631 = vadd.xlane.f32.xlu0 %v630_v6 }
 0x21f   : > { %v621_v53 = vpop.xlane.xlu1 %620 }
 0x220   : > { %635 = vst.msk [vmem:[%s268_s26] sm:$0xf] %vm634_vm5, %v621_v53 }
 0x221   : > { %v632_v54 = vpop.xlane.xlu0 %631 }
 0x222   : > { %636 = vst.msk [vmem:[%s272_s28] sm:$0xf] %vm634_vm5, %v632_v54 }
 0x223 PF: > { %s17_s21 = sadd.s32 1, %s832_s21  }
 0x224   : > { %p14_p4 = scmp.ge.s32.totalorder %s17_s21, 4  }
 0x226   :  { %16 = sbr.rel (!%p14_p4) target bundleno = 1 (0x1), region = 90 }

</bundles_post_ra>
